<compile_context>
chip_gen: v5e
topology: v5e:2x2
jax: 0.10.0
libtpu: 0.0.40
codegen_flags: <defaults>
</compile_context>

<pallas_src>
import jax
import jax.numpy as jnp
from jax.experimental import pallas as pl
from jax.experimental.pallas import tpu as pltpu


def nnpm_edge_kernel(idx_ref, w_ref, hstack_ref, wt_ref, b_ref, o_ref):
    # idx_ref    : (tile_e, 2) int32, columns = [src_e, N + dst_e]
    # w_ref      : (tile_e, 2*Din) edge weights (bf16 or f32 storage)
    # hstack_ref : (2N, 2*Din) f32, rows [0:N) = [h | 0], rows [N:2N) = [0 | h]
    # wt_ref     : (2*Din, Dout) f32  (Linear weight, transposed)
    # b_ref      : (1, Dout) f32
    # o_ref      : (tile_e, Dout)
    idx = idx_ref[...]
    tile_e = idx.shape[0]
    two_n = hstack_ref.shape[0]

    # One-hot selector: onehot[e, n] = 1 iff n == src_e or n == N + dst_e.
    # Pure compare against an iota -> never touches memory with the (possibly
    # garbage) tail indices of a ragged last block.
    n_iota = jax.lax.broadcasted_iota(jnp.int32, (tile_e, two_n), 1)
    hit = (n_iota == idx[:, 0:1]) | (n_iota == idx[:, 1:2])
    onehot = jnp.where(hit, jnp.float32(1), jnp.float32(0))

    # Gather + concat on the MXU: x = concat(h[src], h[dst])  (exact: 0/1 x f32).
    x = jnp.dot(onehot, hstack_ref[...], preferred_element_type=jnp.float32)

    # Edge weighting in f32 (w may be stored bf16; upcast before the multiply).
    xw = x * w_ref[...].astype(jnp.float32)

    # Linear (f32 MXU accumulation) + bias.
    logits = jnp.dot(xw, wt_ref[...], preferred_element_type=jnp.float32) + b_ref[...]

    # sigmoid then softmax over Dout.  sigmoid output is in (0,1) so exp cannot
    # overflow -> no max subtraction.  approx reciprocal => rows sum to 1 +/- ~1e-3.
    s = jax.nn.sigmoid(logits)
    e = jnp.exp(s)
    denom = jnp.sum(e, axis=1, keepdims=True)
    o_ref[...] = (e * pl.reciprocal(denom, approx=True)).astype(o_ref.dtype)


def _round_up(x, m):
    return ((x + m - 1) // m) * m


def nnpm_forward(h, src, dst, w, weight, bias, *, tile_e=4096, w_dtype=jnp.bfloat16):
    """h: (N, Din) node feats; src/dst: (E,) int endpoints; w: (E, 2*Din) edge data;
    weight: (Dout, 2*Din) Linear weight; bias: (Dout,).  Returns (E, Dout)."""
    E = int(src.shape[0])
    N, Din = h.shape
    Dcat = 2 * Din
    Dout = weight.shape[0]
    out_dtype = h.dtype
    w_store = w_dtype if w_dtype is not None else w.dtype

    # --- tiny operands prepared once in the wrapper (all stay f32) ---------------
    z = jnp.zeros((N, Din), h.dtype)
    h_stack = jnp.concatenate(
        [jnp.concatenate([h, z], axis=1),          # rows [0:N)  -> [h | 0]
         jnp.concatenate([z, h], axis=1)],         # rows [N:2N) -> [0 | h]
        axis=0).astype(jnp.float32)                                  # (2N, 2*Din)
    weight_t = weight.T.astype(jnp.float32)                          # (2*Din, Dout)
    bias2d = bias.reshape(1, Dout).astype(jnp.float32)               # (1, Dout)

    # --- per-edge streams ---------------------------------------------------------
    idxc = jnp.stack([src.astype(jnp.int32),
                      dst.astype(jnp.int32) + jnp.int32(N)], axis=1)  # (E, 2)
    w_e = w.astype(w_store)                                           # (E, 2*Din)

    # --- edge tile: multiple of 8 sublanes, no larger than needed, and >=2 grid
    # steps when E allows (v7x has 2 TensorCores on the 'parallel' axis). ----------
    tile_e = max(8, min(int(tile_e), _round_up(E, 8)))
    if E >= 16:
        tile_e = min(tile_e, _round_up(pl.cdiv(E, 2), 8))
    tile_e = _round_up(tile_e, 8)
    grid = (pl.cdiv(E, tile_e),)

    # --- advisory cost estimate for XLA's scheduler --------------------------------
    bytes_accessed = int(
        E * (2 * 4 + Dcat * jnp.dtype(w_store).itemsize)   # idx + w streams
        + E * Dout * jnp.dtype(out_dtype).itemsize         # output
        + h_stack.size * 4 + weight_t.size * 4 + Dout * 4  # resident operands
    )
    cost = pl.CostEstimate(
        flops=int(2 * E * (2 * N) * Dcat + 2 * E * Dcat * Dout + 5 * E * Dout),
        transcendentals=int(3 * E * Dout),
        bytes_accessed=bytes_accessed,
    )

    out = pl.pallas_call(
        nnpm_edge_kernel,
        out_shape=jax.ShapeDtypeStruct((E, Dout), out_dtype),
        grid_spec=pl.GridSpec(
            grid=grid,
            in_specs=[
                pl.BlockSpec((tile_e, 2), lambda i: (i, 0)),        # idx
                pl.BlockSpec((tile_e, Dcat), lambda i: (i, 0)),     # w
                pl.BlockSpec((2 * N, Dcat), lambda i: (0, 0)),      # h_stack (VMEM-resident)
                pl.BlockSpec((Dcat, Dout), lambda i: (0, 0)),       # weight^T
                pl.BlockSpec((1, Dout), lambda i: (0, 0)),          # bias
            ],
            out_specs=pl.BlockSpec((tile_e, Dout), lambda i: (i, 0)),
        ),
        compiler_params=pltpu.CompilerParams(
            dimension_semantics=("parallel",),
            vmem_limit_bytes=48 * 1024 * 1024,   # fits v7x's 64 MiB physical VMEM
        ),
        cost_estimate=cost,
    )(idxc, w_e, h_stack, weight_t, bias2d)

    return out


def nnpm_reference(h, src, dst, w, weight, bias):
    x = w * jnp.concatenate([h[src], h[dst]], axis=1)
    y = x @ weight.T + bias
    y = jax.nn.sigmoid(y)
    return jax.nn.softmax(y, axis=1)


if __name__ == "__main__":
    # Small synthetic graph consistent with the module's shapes.
    s_input_dim = 16
    s_output_dim = 32
    n_nodes = 64
    n_edges = 500          # not a multiple of the tile -> exercises the ragged tail

    key = jax.random.PRNGKey(0)
    k_h, k_w, k_wt, k_b, k_src, k_dst = jax.random.split(key, 6)

    h = jax.random.normal(k_h, (n_nodes, s_input_dim), dtype=jnp.float32)
    src = jax.random.randint(k_src, (n_edges,), 0, n_nodes)
    dst = jax.random.randint(k_dst, (n_edges,), 0, n_nodes)
    w_edge = jax.random.normal(k_w, (n_edges, 2 * s_input_dim), dtype=jnp.float32)

    # PyTorch-style Linear init: uniform(-1/sqrt(fan_in), 1/sqrt(fan_in)).
    fan_in = 2 * s_input_dim
    bound = 1.0 / (fan_in ** 0.5)
    weight = jax.random.uniform(k_wt, (s_output_dim, fan_in),
                                minval=-bound, maxval=bound, dtype=jnp.float32)
    bias = jax.random.uniform(k_b, (s_output_dim,),
                              minval=-bound, maxval=bound, dtype=jnp.float32)

    ref = nnpm_reference(h, src, dst, w_edge, weight, bias)

    # Default path: bf16 w storage (v6e/v7x-friendly), tile auto-clamped to 256
    # -> 2 grid steps on this tiny E (real E would use the full 4096-row tile).
    out = nnpm_forward(h, src, dst, w_edge, weight, bias)
    out = jax.block_until_ready(out)
    assert out.shape == (n_edges, s_output_dim)
    assert jnp.allclose(out, ref, atol=1e-2, rtol=1e-2), "bf16-w mismatch vs reference"

    # f32 w storage (e.g. v5e fallback), smaller tile -> 4 grid steps / ragged tail.
    out_f32 = nnpm_forward(h, src, dst, w_edge, weight, bias,
                           tile_e=128, w_dtype=jnp.float32)
    out_f32 = jax.block_until_ready(out_f32)
    assert out_f32.shape == (n_edges, s_output_dim)
    assert jnp.allclose(out_f32, ref, atol=2e-3, rtol=2e-3), "f32 mismatch vs reference"

    print("KERNEL_OK")
</pallas_src>

<mosaic_0001>
module attributes {stable_mosaic.version = 11 : i64} {
  func.func @nnpm_edge_kernel(%arg0: i32, %arg1: memref<256x2xi32, #tpu.memory_space<vmem>>, %arg2: memref<256x32xbf16, #tpu.memory_space<vmem>>, %arg3: memref<128x32xf32, #tpu.memory_space<vmem>>, %arg4: memref<32x32xf32, #tpu.memory_space<vmem>>, %arg5: memref<1x32xf32, #tpu.memory_space<vmem>>, %arg6: memref<256x32xf32, #tpu.memory_space<vmem>>) attributes {dimension_semantics = [#tpu.dimension_semantics<parallel>], iteration_bounds = array<i64: 2>, scalar_prefetch = 0 : i64, scratch_operands = 0 : i64, tpu.core_type = #tpu.core_type<tc>, window_params = [{transform_indices = @transform_0, window_bounds = array<i64: 256, 2>}, {transform_indices = @transform_1, window_bounds = array<i64: 256, 32>}, {pipeline_mode = #tpu.pipeline_mode<synchronous>, transform_indices = @transform_2, window_bounds = array<i64: 128, 32>}, {pipeline_mode = #tpu.pipeline_mode<synchronous>, transform_indices = @transform_3, window_bounds = array<i64: 32, 32>}, {pipeline_mode = #tpu.pipeline_mode<synchronous>, transform_indices = @transform_4, window_bounds = array<i64: 1, 32>}, {transform_indices = @transform_5, window_bounds = array<i64: 256, 32>}]} {
    %c0 = arith.constant 0 : index
    %c0_0 = arith.constant 0 : index
    %0 = vector.load %arg1[%c0, %c0_0] : memref<256x2xi32, #tpu.memory_space<vmem>>, vector<256x2xi32>
    %1 = tpu.iota {dimensions = array<i32: 1>} : vector<256x128xi32>
    %2 = vector.extract_strided_slice %0 {offsets = [0, 0], sizes = [256, 1], strides = [1, 1]} : vector<256x2xi32> to vector<256x1xi32>
    %3 = vector.broadcast %2 : vector<256x1xi32> to vector<256x128xi32>
    %4 = arith.cmpi eq, %1, %3 : vector<256x128xi32>
    %5 = vector.extract_strided_slice %0 {offsets = [0, 1], sizes = [256, 1], strides = [1, 1]} : vector<256x2xi32> to vector<256x1xi32>
    %6 = vector.broadcast %5 : vector<256x1xi32> to vector<256x128xi32>
    %7 = arith.cmpi eq, %1, %6 : vector<256x128xi32>
    %8 = arith.ori %4, %7 : vector<256x128xi1>
    %cst = arith.constant 1.000000e+00 : f32
    %cst_1 = arith.constant 0.000000e+00 : f32
    %9 = vector.broadcast %cst : f32 to vector<256x128xf32>
    %10 = vector.broadcast %cst_1 : f32 to vector<256x128xf32>
    %11 = arith.select %8, %9, %10 : vector<256x128xi1>, vector<256x128xf32>
    %c0_2 = arith.constant 0 : index
    %c0_3 = arith.constant 0 : index
    %12 = vector.load %arg3[%c0_2, %c0_3] : memref<128x32xf32, #tpu.memory_space<vmem>>, vector<128x32xf32>
    %cst_4 = arith.constant dense<0.000000e+00> : vector<256x32xf32>
    %13 = tpu.matmul %11, %12, %cst_4 {dimension_numbers = #tpu.dot_dimension_numbers<[1], [0], [0], [1], [0, 0, 1, 1], [], []>} : vector<256x128xf32>, vector<128x32xf32>, vector<256x32xf32> -> vector<256x32xf32>
    %c0_5 = arith.constant 0 : index
    %c0_6 = arith.constant 0 : index
    %14 = vector.load %arg2[%c0_5, %c0_6] : memref<256x32xbf16, #tpu.memory_space<vmem>>, vector<256x32xbf16>
    %15 = arith.extf %14 : vector<256x32xbf16> to vector<256x32xf32>
    %16 = arith.mulf %13, %15 : vector<256x32xf32>
    %c0_7 = arith.constant 0 : index
    %c0_8 = arith.constant 0 : index
    %17 = vector.load %arg4[%c0_7, %c0_8] : memref<32x32xf32, #tpu.memory_space<vmem>>, vector<32x32xf32>
    %cst_9 = arith.constant dense<0.000000e+00> : vector<256x32xf32>
    %18 = tpu.matmul %16, %17, %cst_9 {dimension_numbers = #tpu.dot_dimension_numbers<[1], [0], [0], [1], [0, 0, 1, 1], [], []>} : vector<256x32xf32>, vector<32x32xf32>, vector<256x32xf32> -> vector<256x32xf32>
    %c0_10 = arith.constant 0 : index
    %c0_11 = arith.constant 0 : index
    %19 = vector.load %arg5[%c0_10, %c0_11] : memref<1x32xf32, #tpu.memory_space<vmem>>, vector<1x32xf32>
    %20 = vector.broadcast %19 : vector<1x32xf32> to vector<256x32xf32>
    %21 = arith.addf %18, %20 : vector<256x32xf32>
    %22 = arith.negf %21 : vector<256x32xf32>
    %23 = math.exp %22 : vector<256x32xf32>
    %cst_12 = arith.constant 1.000000e+00 : f32
    %24 = vector.broadcast %cst_12 : f32 to vector<256x32xf32>
    %25 = arith.addf %24, %23 : vector<256x32xf32>
    %26 = arith.divf %24, %25 : vector<256x32xf32>
    %27 = math.exp %26 : vector<256x32xf32>
    %cst_13 = arith.constant dense<0.000000e+00> : vector<256xf32>
    %28 = vector.multi_reduction <add>, %27, %cst_13 [1] : vector<256x32xf32> to vector<256xf32>
    %29 = vector.shape_cast %28 : vector<256xf32> to vector<256x1xf32>
    %30 = tpu.reciprocal %29 {approx = true} : vector<256x1xf32> -> vector<256x1xf32>
    %31 = vector.broadcast %30 : vector<256x1xf32> to vector<256x32xf32>
    %32 = arith.mulf %27, %31 : vector<256x32xf32>
    %c0_14 = arith.constant 0 : index
    %c0_15 = arith.constant 0 : index
    %33 = vector.load %arg6[%c0_14, %c0_15] : memref<256x32xf32, #tpu.memory_space<vmem>>, vector<256x32xf32>
    tpu.vector_store %arg6[%c0_14, %c0_15], %32 {strides = array<i32>} : memref<256x32xf32, #tpu.memory_space<vmem>>, vector<256x32xf32>,
    return
  }
  func.func @transform_0(%arg0: i32) -> (i32, i32) {
    %c0_i32 = arith.constant 0 : i32
    %c0_i32_0 = arith.constant 0 : i32
    return %arg0, %c0_i32 : i32, i32
  }
  func.func @transform_1(%arg0: i32) -> (i32, i32) {
    %c0_i32 = arith.constant 0 : i32
    %c0_i32_0 = arith.constant 0 : i32
    return %arg0, %c0_i32 : i32, i32
  }
  func.func @transform_2(%arg0: i32) -> (i32, i32) {
    %c0_i32 = arith.constant 0 : i32
    %c0_i32_0 = arith.constant 0 : i32
    %c0_i32_1 = arith.constant 0 : i32
    return %c0_i32, %c0_i32_0 : i32, i32
  }
  func.func @transform_3(%arg0: i32) -> (i32, i32) {
    %c0_i32 = arith.constant 0 : i32
    %c0_i32_0 = arith.constant 0 : i32
    %c0_i32_1 = arith.constant 0 : i32
    return %c0_i32, %c0_i32_0 : i32, i32
  }
  func.func @transform_4(%arg0: i32) -> (i32, i32) {
    %c0_i32 = arith.constant 0 : i32
    %c0_i32_0 = arith.constant 0 : i32
    %c0_i32_1 = arith.constant 0 : i32
    return %c0_i32, %c0_i32_0 : i32, i32
  }
  func.func @transform_5(%arg0: i32) -> (i32, i32) {
    %c0_i32 = arith.constant 0 : i32
    %c0_i32_0 = arith.constant 0 : i32
    return %arg0, %c0_i32 : i32, i32
  }
}

</mosaic_0001>

<bundles_post_ra>
// kernel: tpu_custom_call.1
= control target key start
LH: loop header
LB: loop body
LE: loop exit
PB: predicated region body
PF: predicated region fallthrough
CT: control target
= control target key end

     0   :  { %s3045_s18 = smov 0   ;;  %s3047_s19 = smov 0   ;;  %s4080_s0 = inlined_call_operand.vmem [shape: s32[500,2], index: 0, kind: input, shape index: {}]   ;;  %s4081_s1 = inlined_call_operand.vmem [shape: bf16[500,32], index: 1, kind: input, shape index: {}]   ;;  %s4082_s2 = inlined_call_operand.vmem [shape: f32[128,32], index: 2, kind: input, shape index: {}]   ;;  %s4083_s3 = inlined_call_operand.vmem [shape: f32[32,32], index: 3, kind: input, shape index: {}]   ;;  %s4084_s4 = inlined_call_operand.vmem [shape: f32[1,32], index: 4, kind: input, shape index: {}]   ;;  %s4085_s5 = inlined_call_operand.vmem [shape: f32[500,32], index: 5, kind: output, shape index: {}]  }
   0x1   :  { %s3049_s20 = smov 0  }
   0x2 LB: > { %s3058_s21 = sadd.s32 4294967295, %s2978_s20   ;;  %s3060_s22 = sadd.s32 1, %s2978_s20   ;;  %s2978_s20 = sphi %s3049_s20, %s4112_s20   ;;  %s2974_s19 = sphi %s3047_s19, %s4111_s19   ;;  %s2970_s18 = sphi %s3045_s18, %s4110_s18  }
   0x3   : > { %s134_s23 = ssub.s32 %s2978_s20, %s3060_s22  ;;  %s137_s24 = sadd.s32 1, %s2974_s19 }
   0x4   : > { %p135_p0 = scmp.eq.s32.totalorder %s134_s23, 0  ;;  %p147_p1 = scmp.ne.s32.totalorder %s2974_s19, %s2970_s18 }
   0x5   : > { %p148_p2 = scmp.eq.s32.totalorder %s3058_s21, 1  ;;  %p2304_p3 = scmp.ge.s32.totalorder %s2978_s20, 1 }
   0x6   : > { %s3068_s25 = scalar_select %p135_p0, %s2974_s19, %s137_s24  }
   0x7   : > { %p3070_p4 = por %p148_p2, %p147_p1  ;;  %p215_p5 = scmp.lt.s32.totalorder %s2978_s20, 3 }
   0x9   : > { %p216_p6 = pnand %p2304_p3, %p215_p5 }
   0xa   : > { %s3075_s27 = sshll.u32 (!%p216_p6), %s3058_s21, 5  ;;  %s252_s24 = sand.u32 (!%p216_p6), 1, %s2970_s18  }
   0xb   : > { %219 = sbr.rel (%p216_p6) target bundleno = 852 (0x354), region = 40  ;;  %p260_p7 = scmp.lt.s32.totalorder (!%p216_p6), %s3075_s27, 62 }
  0x10   : > { %v3012_v0 = vmov 1   ;;  %v3013_v1 = vmov 0   ;;  %s3082_s28 = scalar_select %p260_p7, %s3075_s27, 62  ;;  %v657_v15 = vld [vmem:[%s4082_s2 + $0x78] sm:$0xff]  ;;  %v656_v16 = vld [vmem:[%s4082_s2 + $0x70] sm:$0xff]  ;;  %v655_v17 = vld [vmem:[%s4082_s2 + $0x68] sm:$0xff]  ;;  %v320_v45 = vlaneseq }
  0x11   : > { %2632 = vset.pattern.permute.xlu0 %v3012_v0  ;;  %2635 = vset.pattern.permute.xlu2 %v3013_v1  ;;  %v654_v19 = vld [vmem:[%s4082_s2 + $0x60] sm:$0xff]  ;;  %v653_v20 = vld [vmem:[%s4082_s2 + $0x58] sm:$0xff]  ;;  %v652_v21 = vld [vmem:[%s4082_s2 + $0x50] sm:$0xff]  ;;  %v3014_v52 = vmov 1.0   ;;  %s2423_s8 = sshll.u32 (%p3070_p4), %s3058_s21, 8 }
  0x12   : > { %2633 = vset.pattern.permute.xlu1 %v3013_v1  ;;  %s2307_s29 = sshll.u32 %s3082_s28, 3  ;;  %658 = vmatpush.msra.mxu0 %v657_v15  ;;  %v651_v22 = vld [vmem:[%s4082_s2 + $0x48] sm:$0xff]  ;;  %v650_v24 = vld [vmem:[%s4082_s2 + $0x40] sm:$0xff]  ;;  %v649_v25 = vld [vmem:[%s4082_s2 + $0x38] sm:$0xff]  ;;  %v3192_v46 = vand.u32 127, %v320_v45  ;;  %s2309_s15 = sshll.u32 %s3082_s28, 2 }
  0x13   : > { %s3088_s7 = scalar_lea.vmem %s4080_s0, %s2307_s29  ;;  %2505 = vmatpush.msra.mxu2 %v657_v15  ;;  %2506 = vmatpush.msra.mxu3 %v657_v15  ;;  %v648_v26 = vld [vmem:[%s4082_s2 + $0x30] sm:$0xff]  ;;  %v647_v28 = vld [vmem:[%s4082_s2 + $0x28] sm:$0xff]  ;;  %v646_v29 = vld [vmem:[%s4082_s2 + $0x20] sm:$0xff]  ;;  %s3314_s20 = scalar_lea.vmem %s4081_s1, %s2309_s15 }
  0x14   : > { %v304_v2 = vld [vmem:[%s3088_s7 + $0x80] sm:$0xff]  ;;  %v303_v3 = vld [vmem:[%s3088_s7 + $0x78] sm:$0xff]  ;;  %v306_v5 = vld [vmem:[%s3088_s7 + $0x90] sm:$0xff]  ;;  %659 = vmatpush.msra.mxu0 %v656_v16  ;;  %s2305_s29 = sshll.u32 %s252_s24, 8  ;;  %s3945_s11 = scalar_lea.vmem (%p3070_p4), %s4085_s5, %s2423_s8  }
  0x15   : > { %v288_v4 = vld [vmem:[%s3088_s7] sm:$0xff]  ;;  %371 = vperm.xlu2 %2635, %v304_v2   ;;  %496 = vperm.xlu0 %2632, %v303_v3   ;;  %v289_v6 = vld [vmem:[%s3088_s7 + $0x8] sm:$0xff]  ;;  %v290_v8 = vld [vmem:[%s3088_s7 + $0x10] sm:$0xff]  ;;  %s3626_s6 = scalar_lea.vmem [#allocation2], %s2305_s29  }
  0x16   : > { %323 = vperm.xlu1 %2633, %v288_v4   ;;  %v305_v7 = vld [vmem:[%s3088_s7 + $0x88] sm:$0xff]  ;;  %v292_v9 = vld [vmem:[%s3088_s7 + $0x20] sm:$0xff]  ;;  %v3105_v10 = vld [vmem:[%s3088_s7 + $0xb0] sm:$0xff]  ;;  %2507 = vmatpush.msra.mxu2 %v656_v16 }
  0x17   : > { %v291_v11 = vld [vmem:[%s3088_s7 + $0x18] sm:$0xff]  ;;  %v293_v12 = vld [vmem:[%s3088_s7 + $0x28] sm:$0xff]  ;;  %v308_v14 = vld [vmem:[%s3088_s7 + $0xa0] sm:$0xff]  ;;  %2508 = vmatpush.msra.mxu3 %v656_v16  ;;  %660 = vmatpush.msra.mxu0 %v655_v17 }
  0x18   : > { %v307_v13 = vld [vmem:[%s3088_s7 + $0x98] sm:$0xff]  ;;  %2509 = vmatpush.msra.mxu2 %v655_v17  ;;  %v309_v23 = vld [vmem:[%s3088_s7 + $0xa8] sm:$0xff]  ;;  %v294_v27 = vld [vmem:[%s3088_s7 + $0x30] sm:$0xff] }
  0x19   : > { %v3127_v18 = vld [vmem:[%s3088_s7 + $0xb8] sm:$0xff]  ;;  %2510 = vmatpush.msra.mxu3 %v655_v17  ;;  %661 = vmatpush.msra.mxu0 %v654_v19  ;;  %v3165_v31 = vld [vmem:[%s3088_s7 + $0x50] sm:$0xff]  ;;  %v643_v33 = vld [vmem:[%s4082_s2 + $0x8] sm:$0xff] }
  0x1a   : > { %2511 = vmatpush.msra.mxu2 %v654_v19  ;;  %v645_v30 = vld [vmem:[%s4082_s2 + $0x18] sm:$0xff]  ;;  %v644_v32 = vld [vmem:[%s4082_s2 + $0x10] sm:$0xff]  ;;  %v642_v36 = vld [vmem:[%s4082_s2] sm:$0xff] }
  0x1b   : > { %2512 = vmatpush.msra.mxu3 %v654_v19  ;;  %662 = vmatpush.msra.mxu0 %v653_v20  ;;  %v295_v35 = vld [vmem:[%s3088_s7 + $0x38] sm:$0xff]  ;;  %v297_v37 = vld [vmem:[%s3088_s7 + $0x48] sm:$0xff]  ;;  %v296_v40 = vld [vmem:[%s3088_s7 + $0x40] sm:$0xff] }
  0x1c   : > { %2513 = vmatpush.msra.mxu2 %v653_v20  ;;  %v312_v43 = vld [vmem:[%s3088_s7 + $0xc0] sm:$0xff]  ;;  %v3195_v47 = vld [vmem:[%s3088_s7 + $0xd8] sm:$0xff]  ;;  %v313_v51 = vld [vmem:[%s3088_s7 + $0xc8] sm:$0xff] }
  0x1d   : > { %2636 = vset.pattern.permute.xlu2 %v3012_v0  ;;  %505 = vperm.xlu0 %2632, %v306_v5   ;;  %v3209_v53 = vld [vmem:[%s3088_s7 + $0xe0] sm:$0xff]  ;;  %v3222_v57 = vld [vmem:[%s3088_s7 + $0x70] sm:$0xff]  ;;  %v3234_v62 = vld [vmem:[%s3088_s7 + $0xf8] sm:$0xff] }
  0x1e   : > { %2634 = vset.pattern.permute.xlu1 %v3012_v0  ;;  %499 = vperm.xlu2 %2636, %v304_v2   ;;  %v314_v60 = vld [vmem:[%s3088_s7 + $0xd0] sm:$0xff]  ;;  %v299_v2 = vld [vmem:[%s3088_s7 + $0x58] sm:$0xff]  ;;  %v317_v17 = vld [vmem:[%s3088_s7 + $0xe8] sm:$0xff] }
  0x1f   : > { %451 = vperm.xlu1 %2634, %v288_v4   ;;  %2514 = vmatpush.msra.mxu3 %v653_v20  ;;  %v318_v20 = vld [vmem:[%s3088_s7 + $0xf0] sm:$0xff] }
  0x20   : > { %663 = vmatpush.msra.mxu0 %v652_v21  ;;  %2515 = vmatpush.msra.mxu2 %v652_v21 }
  0x21   : > { %2516 = vmatpush.msra.mxu3 %v652_v21 }
  0x22   : > { %664 = vmatpush.msra.mxu0 %v651_v22  ;;  %2517 = vmatpush.msra.mxu2 %v651_v22 }
  0x23   : > { %2518 = vmatpush.msra.mxu3 %v651_v22 }
  0x24   : > { %665 = vmatpush.msra.mxu0 %v650_v24  ;;  %2519 = vmatpush.msra.mxu2 %v650_v24 }
  0x25   : > { %2640 = vset.pattern.permute.xlu0 %v3013_v1  ;;  %2520 = vmatpush.msra.mxu3 %v650_v24  ;;  %v870_v24 = vld [vmem:[%s4083_s3 + $0x18] sm:$0xff] }
  0x26   : > { %368 = vperm.xlu0 %2640, %v303_v3   ;;  %454 = vperm.xlu2 %2636, %v289_v6  }
  0x27   : > { %2637 = vset.pattern.permute.xlu1 %v3013_v1  ;;  %666 = vmatpush.msra.mxu0 %v649_v25 }
  0x28   : > { %326 = vperm.xlu1 %2637, %v289_v6   ;;  %2521 = vmatpush.msra.mxu2 %v649_v25 }
  0x29   : > { %667 = vmatpush.msra.mxu0 %v648_v26  ;;  %2522 = vmatpush.msra.mxu3 %v649_v25  ;;  %v869_v25 = vld [vmem:[%s4083_s3 + $0x10] sm:$0xff] }
  0x2a   : > { %2523 = vmatpush.msra.mxu2 %v648_v26  ;;  %984 = vmatpush.msra.mxu1 %v870_v24 }
  0x2b   : > { %668 = vmatpush.msra.mxu0 %v647_v28  ;;  %2524 = vmatpush.msra.mxu3 %v648_v26 }
  0x2c   : > { %2525 = vmatpush.msra.mxu2 %v647_v28  ;;  %985 = vmatpush.msra.mxu1 %v869_v25 }
  0x2d   : > { %669 = vmatpush.msra.mxu0 %v646_v29  ;;  %2526 = vmatpush.msra.mxu3 %v647_v28  ;;  %v868_v28 = vld [vmem:[%s4083_s3 + $0x8] sm:$0xff] }
  0x2e   : > { %2639 = vset.pattern.permute.xlu2 %v3013_v1  ;;  %374 = vperm.xlu0 %2640, %v305_v7  }
  0x2f   : > { %329 = vperm.xlu2 %2639, %v290_v8   ;;  %2527 = vmatpush.msra.mxu2 %v646_v29 }
  0x30   : > { %2638 = vset.pattern.permute.xlu1 %v3012_v0  ;;  %670 = vmatpush.msra.mxu0 %v645_v30 }
  0x31   : > { %502 = vperm.xlu1 %2638, %v305_v7   ;;  %2529 = vmatpush.msra.mxu2 %v645_v30  ;;  %v300_v7 = vld [vmem:[%s3088_s7 + $0x60] sm:$0xff] }
  0x32   : > { %671 = vmatpush.msra.mxu0 %v644_v32  ;;  %2528 = vmatpush.msra.mxu3 %v646_v29  ;;  %v867_v29 = vld [vmem:[%s4083_s3] sm:$0xff] }
  0x33   : > { %2531 = vmatpush.msra.mxu2 %v644_v32  ;;  %986 = vmatpush.msra.mxu1 %v868_v28 }
  0x34   : > { %672 = vmatpush.msra.mxu0 %v643_v33  ;;  %2530 = vmatpush.msra.mxu3 %v645_v30 }
  0x35   : > { %2533 = vmatpush.msra.mxu2 %v643_v33  ;;  %987 = vmatpush.msra.mxu1 %v867_v29 }
  0x36   : > { %335 = vperm.xlu0 %2640, %v292_v9   ;;  %673 = vmatpush.msra.mxu0 %v642_v36 }
  0x37   : > { %377 = vperm.xlu2 %2639, %v306_v5   ;;  %2535 = vmatpush.msra.mxu2 %v642_v36 }
  0x38   : > { %2532 = vmatpush.msra.mxu3 %v644_v32 }
  0x39   : > { %457 = vperm.xlu1 %2638, %v290_v8  }
  0x3a   : > { %2534 = vmatpush.msra.mxu3 %v643_v33 }
  0x3c   : > { %2536 = vmatpush.msra.mxu3 %v642_v36 }
  0x3e   : > { %389 = vperm.xlu0 %2640, %v3105_v10   ;;  %2537 = vmatpush.msrb.mxu3 %v870_v24  ;;  %v2499_v24 = vld [vmem:[%s3314_s20 + $0x50] sm:$0xff]  }
  0x3f   : > { %2642 = vset.pattern.permute.xlu2 %v3012_v0 }
  0x40   : > { %460 = vperm.xlu2 %2642, %v291_v11   ;;  %2538 = vmatpush.msrb.mxu3 %v869_v25 }
  0x41   : > { %2641 = vset.pattern.permute.xlu1 %v3013_v1 }
  0x42   : > { %332 = vperm.xlu1 %2641, %v291_v11   ;;  %2539 = vmatpush.msrb.mxu3 %v868_v28 }
  0x44   : > { %2540 = vmatpush.msrb.mxu3 %v867_v29 }
  0x46   : > { %2647 = vset.pattern.permute.xlu0 %v3012_v0 }
  0x47   : > { %466 = vperm.xlu0 %2647, %v293_v12  }
  0x48   : > { %508 = vperm.xlu2 %2642, %v307_v13  }
  0x4a   : > { %380 = vperm.xlu1 %2641, %v307_v13   ;;  %v301_v13 = vld [vmem:[%s3088_s7 + $0x68] sm:$0xff]  ;;  %s1957_s7 = ssub.s32 (%p3070_p4), 63, %s3075_s27 }
  0x4b   : > { %p1958_p8 = scmp.lt.s32.totalorder (%p3070_p4), %s1957_s7, 32 }
  0x4f   : > { %520 = vperm.xlu0 %2647, %v3127_v18  }
  0x50   : > { %2644 = vset.pattern.permute.xlu2 %v3013_v1 }
  0x51   : > { %383 = vperm.xlu2 %2644, %v308_v14  }
  0x52   : > { %2643 = vset.pattern.permute.xlu1 %v3012_v0 }
  0x53   : > { %463 = vperm.xlu1 %2643, %v292_v9  }
  0x57   : > { %481 = vperm.xlu0 %2647, %v3165_v31  }
  0x59   : > { %338 = vperm.xlu2 %2644, %v293_v12  }
  0x5b   : > { %511 = vperm.xlu1 %2643, %v308_v14  }
  0x5f   : > { %2654 = vset.pattern.permute.xlu0 %v3013_v1 }
  0x60   : > { %350 = vperm.xlu0 %2654, %v297_v37  }
  0x61   : > { %2646 = vset.pattern.permute.xlu2 %v3012_v0 }
  0x62   : > { %514 = vperm.xlu2 %2646, %v309_v23  }
  0x63   : > { %2645 = vset.pattern.permute.xlu1 %v3013_v1 }
  0x64   : > { %386 = vperm.xlu1 %2645, %v309_v23  }
  0x68   : > { %404 = vperm.xlu0 %2654, %v3195_v47  }
  0x6a   : > { %469 = vperm.xlu2 %2646, %v294_v27  }
  0x6c   : > { %341 = vperm.xlu1 %2645, %v294_v27  }
  0x6f   : > { %v3174_v34 = vpop.permute.xlu2 %371 }
  0x70   : > { %2659 = vset.pattern.permute.xlu0 %v3012_v0  ;;  %vm434_vm9 = vcmp.eq.s32.totalorder %v3192_v46, %v3174_v34 }
  0x71   : > { %535 = vperm.xlu0 %2659, %v3209_v53  }
  0x72   : > { %2649 = vset.pattern.permute.xlu2 %v3013_v1 }
  0x73   : > { %344 = vperm.xlu2 %2649, %v295_v35  }
  0x74   : > { %2648 = vset.pattern.permute.xlu1 %v3012_v0 }
  0x75   : > { %517 = vperm.xlu1 %2648, %v3105_v10  }
  0x78   : > { %v500_v38 = vpop.permute.xlu2 %499 }
  0x79   : > { %vm562_vm10 = vcmp.eq.s32.totalorder %v3192_v46, %v500_v38  ;;  %2662 = vset.pattern.permute.xlu0 %v3013_v1  ;;  %v2427_v38 = vld [vmem:[%s3314_s20] sm:$0xff]  }
  0x7a   : > { %365 = vperm.xlu0 %2662, %v3222_v57   ;;  %vm594_vm11 = vmor %vm434_vm9, %vm562_vm10 }
  0x7b   : > { %392 = vperm.xlu2 %2649, %v3127_v18  }
  0x7d   : > { %472 = vperm.xlu1 %2648, %v295_v35  }
  0x80   : > { %v455_v39 = vpop.permute.xlu2 %454 }
  0x81   : > { %vm547_vm4 = vcmp.eq.s32.totalorder %v3192_v46, %v455_v39  ;;  %v2428_v39 = vunpack.c.l.bf16 %v2427_v38 }
  0x82   : > { %2665 = vset.pattern.permute.xlu0 %v3012_v0 }
  0x83   : > { %2651 = vset.pattern.permute.xlu2 %v3012_v0  ;;  %544 = vperm.xlu0 %2665, %v3234_v62  }
  0x84   : > { %475 = vperm.xlu2 %2651, %v296_v40  }
  0x85   : > { %2650 = vset.pattern.permute.xlu1 %v3013_v1 }
  0x86   : > { %347 = vperm.xlu1 %2650, %v296_v40  }
  0x87   : > { %v497_v41 = vpop.permute.xlu0 %496 }
  0x88   : > { %v324_v42 = vpop.permute.xlu1 %323  ;;  %vm561_vm3 = vcmp.eq.s32.totalorder %v3192_v46, %v497_v41 }
  0x89   : > { %v3190_v44 = vpop.permute.xlu2 %329  ;;  %vm418_vm0 = vcmp.eq.s32.totalorder %v3192_v46, %v324_v42 }
  0x8a   : > { %vm420_vm14 = vcmp.eq.s32.totalorder %v3192_v46, %v3190_v44  ;;  %v2429_v44 = vunpack.c.h.bf16 %v2427_v38 }
  0x8c   : > { %523 = vperm.xlu2 %2651, %v312_v43  }
  0x8e   : > { %395 = vperm.xlu1 %2650, %v312_v43  }
  0x8f   : > { %v3197_v48 = vpop.permute.xlu0 %505 }
  0x91   : > { %v452_v49 = vpop.permute.xlu1 %451  ;;  %v378_v50 = vpop.permute.xlu2 %377 }
  0x92   : > { %vm546_vm1 = vcmp.eq.s32.totalorder %v3192_v46, %v452_v49 }
  0x93   : > { %vm578_vm2 = vmor %vm418_vm0, %vm546_vm1 }
  0x94   : > { %2310 = vmatmul.msk.f32.vlgmr.msra.gmra.mxu0 %vm578_vm2, %v3014_v52  ;;  %2653 = vset.pattern.permute.xlu2 %v3013_v1  ;;  %vm564_vm2 = vcmp.eq.s32.totalorder %v3192_v46, %v3197_v48 }
  0x95   : > { %398 = vperm.xlu2 %2653, %v313_v51  }
  0x96   : > { %2652 = vset.pattern.permute.xlu1 %v3012_v0 }
  0x97   : > { %478 = vperm.xlu1 %2652, %v297_v37  }
  0x98   : > { %v369_v54 = vpop.permute.xlu0 %368 }
  0x99   : > { %vm433_vm5 = vcmp.eq.s32.totalorder %v3192_v46, %v369_v54 }
  0x9a   : > { %vm593_vm6 = vmor %vm433_vm5, %vm561_vm3  ;;  %v327_v55 = vpop.permute.xlu1 %326  ;;  %v461_v56 = vpop.permute.xlu2 %460  ;;  %vm436_vm3 = vcmp.eq.s32.totalorder %v3192_v46, %v378_v50 }
  0x9b   : > { %vm419_vm7 = vcmp.eq.s32.totalorder %v3192_v46, %v327_v55  ;;  %2325 = vmatmul.msk.f32.vlgmr.msra.gmra.mxu2 %vm593_vm6, %v3014_v52  ;;  %vm549_vm5 = vcmp.eq.s32.totalorder %v3192_v46, %v461_v56  ;;  %v2490_v56 = vld [vmem:[%s3314_s20 + $0x8] sm:$0xff]  }
  0x9c   : > { %vm579_vm8 = vmor %vm419_vm7, %vm547_vm4 }
  0x9d   : > { %2311 = vmatmul.msk.f32.gmra.mxu0 %vm579_vm8, %v3014_v52  ;;  %353 = vperm.xlu2 %2653, %v3165_v31   ;;  %vm596_vm4 = vmor %vm436_vm3, %vm564_vm2 }
  0x9f   : > { %526 = vperm.xlu1 %2652, %v313_v51  }
  0xa0   : > { %v375_v61 = vpop.permute.xlu0 %374 }
  0xa1   : > { %vm435_vm12 = vcmp.eq.s32.totalorder %v3192_v46, %v375_v61 }
  0xa2   : > { %v509_v58 = vpop.permute.xlu2 %508 }
  0xa3   : > { %v503_v59 = vpop.permute.xlu1 %502  ;;  %2326 = vmatmul.msk.f32.gmra.mxu2 %vm594_vm11, %v3014_v52  ;;  %vm565_vm8 = vcmp.eq.s32.totalorder %v3192_v46, %v509_v58 }
  0xa4   : > { %vm563_vm13 = vcmp.eq.s32.totalorder %v3192_v46, %v503_v59 }
  0xa5   : > { %2656 = vset.pattern.permute.xlu2 %v3012_v0  ;;  %vm595_vm15 = vmor %vm435_vm12, %vm563_vm13 }
  0xa6   : > { %529 = vperm.xlu2 %2656, %v314_v60  }
  0xa7   : > { %2655 = vset.pattern.permute.xlu1 %v3013_v1 }
  0xa8   : > { %401 = vperm.xlu1 %2655, %v314_v60   ;;  %v336_v5 = vpop.permute.xlu0 %335 }
  0xa9   : > { %vm422_vm11 = vcmp.eq.s32.totalorder %v3192_v46, %v336_v5 }
  0xab   : > { %v458_v63 = vpop.permute.xlu1 %457  ;;  %2327 = vmatmul.msk.f32.gmra.mxu2 %vm595_vm15, %v3014_v52  ;;  %v384_v3 = vpop.permute.xlu2 %383 }
  0xac   : > { %vm548_vm0 = vcmp.eq.s32.totalorder %v3192_v46, %v458_v63 }
  0xad   : > { %vm580_vm1 = vmor %vm420_vm14, %vm548_vm0  ;;  %vm438_vm0 = vcmp.eq.s32.totalorder %v3192_v46, %v384_v3 }
  0xae   : > { %2312 = vmatmul.msk.f32.gmra.mxu0 %vm580_vm1, %v3014_v52  ;;  %484 = vperm.xlu2 %2656, %v299_v2  }
  0xb0   : > { %356 = vperm.xlu1 %2655, %v299_v2   ;;  %v390_v10 = vpop.permute.xlu0 %389  ;;  %v2433_v2 = vunpack.c.h.bf16 %v2490_v56 }
  0xb3   : > { %2328 = vmatmul.msk.f32.gmra.mxu2 %vm596_vm4, %v3014_v52  ;;  %v339_v4 = vpop.permute.xlu2 %338 }
  0xb4   : > { %v333_v6 = vpop.permute.xlu1 %332  ;;  %vm423_vm14 = vcmp.eq.s32.totalorder %v3192_v46, %v339_v4 }
  0xb5   : > { %vm421_vm6 = vcmp.eq.s32.totalorder %v3192_v46, %v333_v6 }
  0xb6   : > { %vm581_vm7 = vmor %vm421_vm6, %vm549_vm5  ;;  %2658 = vset.pattern.permute.xlu2 %v3013_v1 }
  0xb7   : > { %2313 = vmatmul.msk.f32.gmra.mxu0 %vm581_vm7, %v3014_v52  ;;  %359 = vperm.xlu2 %2658, %v300_v7  }
  0xb8   : > { %2657 = vset.pattern.permute.xlu1 %v3012_v0 }
  0xb9   : > { %532 = vperm.xlu1 %2657, %v3195_v47   ;;  %v467_v14 = vpop.permute.xlu0 %466 }
  0xba   : > { %vm551_vm15 = vcmp.eq.s32.totalorder %v3192_v46, %v467_v14 }
  0xbb   : > { %vm583_vm1 = vmor %vm423_vm14, %vm551_vm15 }
  0xbc   : > { %v381_v8 = vpop.permute.xlu1 %380  ;;  %v515_v9 = vpop.permute.xlu2 %514 }
  0xbd   : > { %vm437_vm9 = vcmp.eq.s32.totalorder %v3192_v46, %v381_v8  ;;  %vm567_vm4 = vcmp.eq.s32.totalorder %v3192_v46, %v515_v9 }
  0xbe   : > { %vm597_vm10 = vmor %vm437_vm9, %vm565_vm8 }
  0xbf   : > { %2329 = vmatmul.msk.f32.gmra.mxu2 %vm597_vm10, %v3014_v52  ;;  %407 = vperm.xlu2 %2658, %v3209_v53   ;;  %vm440_vm10 = vcmp.eq.s32.totalorder %v3192_v46, %v390_v10 }
  0xc1   : > { %487 = vperm.xlu1 %2657, %v300_v7  }
  0xc4   : > { %v470_v11 = vpop.permute.xlu2 %469 }
  0xc5   : > { %v464_v12 = vpop.permute.xlu1 %463  ;;  %vm552_vm7 = vcmp.eq.s32.totalorder %v3192_v46, %v470_v11  ;;  %v2498_v11 = vld [vmem:[%s3314_s20 + $0x48] sm:$0xff]  }
  0xc6   : > { %vm550_vm12 = vcmp.eq.s32.totalorder %v3192_v46, %v464_v12  ;;  %v2491_v12 = vld [vmem:[%s3314_s20 + $0x10] sm:$0xff]  }
  0xc7   : > { %vm582_vm13 = vmor %vm422_vm11, %vm550_vm12  ;;  %2661 = vset.pattern.permute.xlu2 %v3012_v0 }
  0xc8   : > { %2314 = vmatmul.msk.f32.gmra.mxu0 %vm582_vm13, %v3014_v52  ;;  %490 = vperm.xlu2 %2661, %v301_v13  }
  0xc9   : > { %2660 = vset.pattern.permute.xlu1 %v3013_v1 }
  0xca   : > { %362 = vperm.xlu1 %2660, %v301_v13   ;;  %v2464_v13 = vunpack.c.l.bf16 %v2498_v11 }
  0xcd   : > { %v512_v15 = vpop.permute.xlu1 %511  ;;  %v345_v16 = vpop.permute.xlu2 %344 }
  0xce   : > { %vm566_vm2 = vcmp.eq.s32.totalorder %v3192_v46, %v512_v15  ;;  %vm425_vm15 = vcmp.eq.s32.totalorder %v3192_v46, %v345_v16  ;;  %v2436_v15 = vunpack.c.l.bf16 %v2491_v12 }
  0xcf   : > { %vm598_vm3 = vmor %vm438_vm0, %vm566_vm2 }
  0xd0   : > { %2315 = vmatmul.msk.f32.gmra.mxu0 %vm583_vm1, %v3014_v52  ;;  %2330 = vmatmul.msk.f32.gmra.mxu2 %vm598_vm3, %v3014_v52 }
  0xd1   : > { %538 = vperm.xlu2 %2661, %v317_v17  }
  0xd2   : > { %410 = vperm.xlu1 %2660, %v317_v17  }
  0xd5   : > { %v393_v18 = vpop.permute.xlu2 %392 }
  0xd6   : > { %v387_v19 = vpop.permute.xlu1 %386  ;;  %vm441_vm13 = vcmp.eq.s32.totalorder %v3192_v46, %v393_v18 }
  0xd7   : > { %vm439_vm5 = vcmp.eq.s32.totalorder %v3192_v46, %v387_v19 }
  0xd8   : > { %vm599_vm6 = vmor %vm439_vm5, %vm567_vm4 }
  0xd9   : > { %2664 = vset.pattern.permute.xlu2 %v3013_v1  ;;  %2331 = vmatmul.msk.f32.gmra.mxu2 %vm599_vm6, %v3014_v52 }
  0xda   : > { %413 = vperm.xlu2 %2664, %v318_v20   ;;  %2663 = vset.pattern.permute.xlu1 %v3012_v0  ;;  %v521_v0 = vpop.permute.xlu0 %520 }
  0xdb   : > { %493 = vperm.xlu1 %2663, %v3222_v57   ;;  %vm569_vm14 = vcmp.eq.s32.totalorder %v3192_v46, %v521_v0  ;;  %v2432_v57 = vunpack.c.l.bf16 %v2490_v56 }
  0xdc   : > { %vm601_vm0 = vmor %vm441_vm13, %vm569_vm14 }
  0xde   : > { %v342_v21 = vpop.permute.xlu1 %341  ;;  %v476_v22 = vpop.permute.xlu2 %475 }
  0xdf   : > { %vm424_vm8 = vcmp.eq.s32.totalorder %v3192_v46, %v342_v21  ;;  %vm554_vm3 = vcmp.eq.s32.totalorder %v3192_v46, %v476_v22  ;;  %v2437_v22 = vunpack.c.h.bf16 %v2491_v12 }
  0xe0   : > { %vm584_vm9 = vmor %vm424_vm8, %vm552_vm7 }
  0xe1   : > { %2316 = vmatmul.msk.f32.gmra.mxu0 %vm584_vm9, %v3014_v52 }
  0xe2   : > { %416 = vperm.xlu2 %2664, %v3234_v62   ;;  %v482_v32 = vpop.permute.xlu0 %481 }
  0xe3   : > { %541 = vperm.xlu1 %2663, %v318_v20   ;;  %vm556_vm13 = vcmp.eq.s32.totalorder %v3192_v46, %v482_v32  ;;  %v2465_v20 = vunpack.c.h.bf16 %v2498_v11  ;;  %v2502_v11 = vld [vmem:[%s3314_s20 + $0x68] sm:$0xff]  }
  0xe6   : > { %v524_v1 = vpop.permute.xlu2 %523 }
  0xe7   : > { %v518_v23 = vpop.permute.xlu1 %517  ;;  %vm570_vm6 = vcmp.eq.s32.totalorder %v3192_v46, %v524_v1 }
  0xe8   : > { %vm568_vm11 = vcmp.eq.s32.totalorder %v3192_v46, %v518_v23 }
  0xe9   : > { %vm600_vm12 = vmor %vm440_vm10, %vm568_vm11 }
  0xea   : > { %2332 = vmatmul.msk.f32.gmra.mxu2 %vm600_vm12, %v3014_v52  ;;  %v351_v35 = vpop.permute.xlu0 %350 }
  0xeb   : > { %vm427_vm9 = vcmp.eq.s32.totalorder %v3192_v46, %v351_v35 }
  0xef   : > { %v473_v26 = vpop.permute.xlu1 %472  ;;  %v399_v27 = vpop.permute.xlu2 %398 }
  0xf0   : > { %vm553_vm1 = vcmp.eq.s32.totalorder %v3192_v46, %v473_v26  ;;  %vm443_vm14 = vcmp.eq.s32.totalorder %v3192_v46, %v399_v27  ;;  %v2468_v26 = vunpack.c.l.bf16 %v2499_v24 }
  0xf1   : > { %vm585_vm2 = vmor %vm425_vm15, %vm553_vm1  ;;  %vm875_vm1 = vcmask 261120  }
  0xf2   : > { %2317 = vmatmul.msk.f32.gmra.mxu0 %vm585_vm2, %v3014_v52  ;;  %2333 = vmatmul.msk.f32.gmra.mxu2 %vm601_vm0, %v3014_v52  ;;  %v405_v45 = vpop.permute.xlu0 %404 }
  0xf7   : > { %v354_v30 = vpop.permute.xlu2 %353 }
  0xf8   : > { %v348_v31 = vpop.permute.xlu1 %347  ;;  %vm428_vm12 = vcmp.eq.s32.totalorder %v3192_v46, %v354_v30  ;;  %v2492_v30 = vld [vmem:[%s3314_s20 + $0x18] sm:$0xff]  }
  0xf9   : > { %vm426_vm4 = vcmp.eq.s32.totalorder %v3192_v46, %v348_v31  ;;  %vm588_vm15 = vmor %vm428_vm12, %vm556_vm13  ;;  %v2469_v31 = vunpack.c.h.bf16 %v2499_v24  ;;  %v2440_v32 = vunpack.c.l.bf16 %v2492_v30 }
  0xfa   : > { %vm586_vm5 = vmor %vm426_vm4, %vm554_vm3  ;;  %v536_v55 = vpop.permute.xlu0 %535 }
  0xfb   : > { %2318 = vmatmul.msk.f32.gmra.mxu0 %vm586_vm5, %v3014_v52  ;;  %vm574_vm13 = vcmp.eq.s32.totalorder %v3192_v46, %v536_v55 }
 0x100   : > { %v396_v33 = vpop.permute.xlu1 %395  ;;  %v530_v34 = vpop.permute.xlu2 %529 }
 0x101   : > { %vm442_vm7 = vcmp.eq.s32.totalorder %v3192_v46, %v396_v33  ;;  %vm572_vm3 = vcmp.eq.s32.totalorder %v3192_v46, %v530_v34 }
 0x102   : > { %vm602_vm8 = vmor %vm442_vm7, %vm570_vm6  ;;  %v366_v63 = vpop.permute.xlu0 %365 }
 0x103   : > { %2334 = vmatmul.msk.f32.gmra.mxu2 %vm602_vm8, %v3014_v52 }
 0x108   : > { %v485_v36 = vpop.permute.xlu2 %484 }
 0x109   : > { %v479_v37 = vpop.permute.xlu1 %478  ;;  %vm557_vm6 = vcmp.eq.s32.totalorder %v3192_v46, %v485_v36 }
 0x10a   : > { %vm555_vm10 = vcmp.eq.s32.totalorder %v3192_v46, %v479_v37  ;;  %v545_v8 = vpop.permute.xlu0 %544  ;;  %v2500_v37 = vld [vmem:[%s3314_s20 + $0x58] sm:$0xff]  }
 0x10b   : > { %vm587_vm11 = vmor %vm427_vm9, %vm555_vm10  ;;  %vm445_vm9 = vcmp.eq.s32.totalorder %v3192_v46, %v405_v45  ;;  %v2472_v38 = vunpack.c.l.bf16 %v2500_v37 }
 0x10c   : > { %2319 = vmatmul.msk.f32.gmra.mxu0 %vm587_vm11, %v3014_v52 }
 0x111   : > { %v675_v40 = vpop.f32.mrf.mxu0  ;;  %v527_v41 = vpop.permute.xlu1 %526 }
 0x112   : > { %v835_v42 = vmul.f32 %v2428_v39, %v675_v40  ;;  %vm571_vm0 = vcmp.eq.s32.totalorder %v3192_v46, %v527_v41  ;;  %v360_v43 = vpop.permute.xlu2 %359 }
 0x113   : > { %vm603_vm2 = vmor %vm443_vm14, %vm571_vm0  ;;  %vm430_vm14 = vcmp.eq.s32.totalorder %v3192_v46, %v360_v43  ;;  %v2493_v43 = vld [vmem:[%s3314_s20 + $0x20] sm:$0xff]  }
 0x114   : > { %2320 = vmatmul.msk.f32.gmra.mxu0 %vm588_vm15, %v3014_v52  ;;  %2335 = vmatmul.msk.f32.gmra.mxu2 %vm603_vm2, %v3014_v52  ;;  %v2444_v45 = vunpack.c.l.bf16 %v2493_v43  ;;  %v2445_v55 = vunpack.c.h.bf16 %v2493_v43 }
 0x115   : > { %2342 = vmatmul.msk.f32.vlgmr.msra.gmra.mxu1 %vm875_vm1, %v835_v42  ;;  %v2473_v42 = vunpack.c.h.bf16 %v2500_v37 }
 0x11a   : > { %v678_v47 = vpop.f32.mrf.mxu0  ;;  %v402_v48 = vpop.permute.xlu1 %401 }
 0x11b   : > { %v836_v49 = vmul.f32 %v2429_v44, %v678_v47  ;;  %vm444_vm4 = vcmp.eq.s32.totalorder %v3192_v46, %v402_v48  ;;  %v408_v50 = vpop.permute.xlu2 %407 }
 0x11c   : > { %vm604_vm5 = vmor %vm444_vm4, %vm572_vm3  ;;  %vm446_vm12 = vcmp.eq.s32.totalorder %v3192_v46, %v408_v50  ;;  %vm577_vm3 = vcmp.eq.s32.totalorder %v3192_v46, %v545_v8  ;;  %v2501_v50 = vld [vmem:[%s3314_s20 + $0x60] sm:$0xff]  }
 0x11d   : > { %2336 = vmatmul.msk.f32.gmra.mxu2 %vm604_vm5, %v3014_v52  ;;  %2343 = vmatmul.msk.f32.gmra.mxu1 %vm875_vm1, %v836_v49  ;;  %vm606_vm15 = vmor %vm446_vm12, %vm574_vm13  ;;  %vm432_vm12 = vcmp.eq.s32.totalorder %v3192_v46, %v366_v63 }
 0x11e   : > { %v3332_v54 = vpop.f32.mrf.mxu2 }
 0x122   : > { %v357_v51 = vpop.permute.xlu1 %356 }
 0x123   : > { %vm429_vm7 = vcmp.eq.s32.totalorder %v3192_v46, %v357_v51  ;;  %v491_v53 = vpop.permute.xlu2 %490  ;;  %v2476_v51 = vunpack.c.l.bf16 %v2501_v50 }
 0x124   : > { %vm589_vm8 = vmor %vm429_vm7, %vm557_vm6  ;;  %vm559_vm4 = vcmp.eq.s32.totalorder %v3192_v46, %v491_v53 }
 0x125   : > { %2321 = vmatmul.msk.f32.gmra.mxu0 %vm589_vm8, %v3014_v52 }
 0x126   : > { %v3338_v62 = vpop.f32.mrf.mxu2 }
 0x12b   : > { %v681_v58 = vpop.f32.mrf.mxu0  ;;  %v533_v59 = vpop.permute.xlu1 %532 }
 0x12c   : > { %v837_v60 = vmul.f32 %v2432_v57, %v681_v58  ;;  %vm573_vm10 = vcmp.eq.s32.totalorder %v3192_v46, %v533_v59  ;;  %v539_v61 = vpop.permute.xlu2 %538  ;;  %v2494_v59 = vld [vmem:[%s3314_s20 + $0x28] sm:$0xff]  }
 0x12d   : > { %vm605_vm11 = vmor %vm445_vm9, %vm573_vm10  ;;  %vm575_vm9 = vcmp.eq.s32.totalorder %v3192_v46, %v539_v61  ;;  %v3390_v61 = vld [vmem:[%s4084_s4] ss:$0 sm:$0xff] }
 0x12e   : > { %2337 = vmatmul.msk.f32.gmra.mxu2 %vm605_vm11, %v3014_v52  ;;  %2344 = vmatmul.msk.f32.gmra.mxu1 %vm875_vm1, %v837_v60  ;;  %v3349_v7 = vpop.f32.mrf.mxu2  ;;  %v2448_v60 = vunpack.c.l.bf16 %v2494_v59 }
 0x133   : > { %v488_v3 = vpop.permute.xlu1 %487 }
 0x134   : > { %vm558_vm0 = vcmp.eq.s32.totalorder %v3192_v46, %v488_v3  ;;  %v414_v4 = vpop.permute.xlu2 %413  ;;  %v684_v5 = vpop.f32.mrf.mxu0 }
 0x135   : > { %vm590_vm2 = vmor %vm430_vm14, %vm558_vm0  ;;  %v838_v6 = vmul.f32 %v2433_v2, %v684_v5  ;;  %v2477_v5 = vunpack.c.h.bf16 %v2501_v50 }
 0x136   : > { %2322 = vmatmul.msk.f32.gmra.mxu0 %vm590_vm2, %v3014_v52  ;;  %2338 = vmatmul.msk.f32.gmra.mxu2 %vm606_vm15, %v3014_v52  ;;  %v729_v14 = vpop.f32.mrf.mxu2  ;;  %vm448_vm15 = vcmp.eq.s32.totalorder %v3192_v46, %v414_v4 }
 0x137   : > { %2345 = vmatmul.msk.f32.gmra.mxu1 %vm875_vm1, %v838_v6  ;;  %v853_v17 = vmul.f32 %v2464_v13, %v729_v14 }
 0x13c   : > { %v417_v9 = vpop.permute.xlu2 %416  ;;  %v363_v10 = vpop.permute.xlu1 %362 }
 0x13d   : > { %vm449_vm5 = vcmp.eq.s32.totalorder %v3192_v46, %v417_v9  ;;  %vm431_vm6 = vcmp.eq.s32.totalorder %v3192_v46, %v363_v10 }
 0x13e   : > { %vm609_vm7 = vmor %vm449_vm5, %vm577_vm3 }
 0x13f   : > { %vm591_vm8 = vmor %vm431_vm6, %vm559_vm4  ;;  %2341 = vmatmul.msk.f32.vlgmr.msra.gmra.mxu3 %vm609_vm7, %v3014_v52 }
 0x140   : > { %2323 = vmatmul.msk.f32.gmra.mxu0 %vm591_vm8, %v3014_v52 }
 0x142   : > { %v732_v21 = vpop.f32.mrf.mxu2 }
 0x143   : > { %v854_v1 = vmul.f32 %v2465_v20, %v732_v21 }
 0x144   : > { %v411_v16 = vpop.permute.xlu1 %410 }
 0x145   : > { %vm447_vm10 = vcmp.eq.s32.totalorder %v3192_v46, %v411_v16  ;;  %v687_v18 = vpop.f32.mrf.mxu0 }
 0x146   : > { %vm607_vm11 = vmor %vm447_vm10, %vm575_vm9  ;;  %v839_v19 = vmul.f32 %v2436_v15, %v687_v18  ;;  %v2480_v15 = vunpack.c.l.bf16 %v2502_v11 }
 0x147   : > { %2339 = vmatmul.msk.f32.gmra.mxu2 %vm607_vm11, %v3014_v52  ;;  %2360 = vmatmul.msk.f32.vlgmr.msrb.gmra.mxu3 %vm875_vm1, %v853_v17  ;;  %v2449_v17 = vunpack.c.h.bf16 %v2494_v59 }
 0x148   : > { %2346 = vmatmul.msk.f32.gmra.mxu1 %vm875_vm1, %v839_v19 }
 0x14d   : > { %v690_v23 = vpop.f32.mrf.mxu0  ;;  %v494_v0 = vpop.permute.xlu1 %493 }
 0x14e   : > { %v840_v25 = vmul.f32 %v2437_v22, %v690_v23  ;;  %vm560_vm13 = vcmp.eq.s32.totalorder %v3192_v46, %v494_v0 }
 0x14f   : > { %vm592_vm14 = vmor %vm432_vm12, %vm560_vm13  ;;  %2361 = vmatmul.msk.f32.gmra.mxu3 %vm875_vm1, %v854_v1 }
 0x150   : > { %2324 = vmatmul.msk.f32.gmra.mxu0 %vm592_vm14, %v3014_v52  ;;  %2347 = vmatmul.msk.f32.gmra.mxu1 %vm875_vm1, %v840_v25 }
 0x153   : > { %v735_v27 = vpop.f32.mrf.mxu2 }
 0x154   : > { %v855_v28 = vmul.f32 %v2468_v26, %v735_v27 }
 0x155   : > { %v542_v29 = vpop.permute.xlu1 %541 }
 0x156   : > { %vm576_vm0 = vcmp.eq.s32.totalorder %v3192_v46, %v542_v29  ;;  %v2441_v46 = vunpack.c.h.bf16 %v2492_v30  ;;  %v2495_v30 = vld [vmem:[%s3314_s20 + $0x30] sm:$0xff]  }
 0x157   : > { %vm608_vm2 = vmor %vm448_vm15, %vm576_vm0  ;;  %2362 = vmatmul.msk.f32.gmra.mxu3 %vm875_vm1, %v855_v28 }
 0x158   : > { %2340 = vmatmul.msk.f32.gmra.mxu2 %vm608_vm2, %v3014_v52 }
 0x15c   : > { %v738_v33 = vpop.f32.mrf.mxu2 }
 0x15d   : > { %v856_v34 = vmul.f32 %v2469_v31, %v738_v33 }
 0x15e   : > { %v693_v35 = vpop.f32.mrf.mxu0 }
 0x15f   : > { %v841_v36 = vmul.f32 %v2440_v32, %v693_v35  ;;  %2363 = vmatmul.msk.f32.gmra.mxu3 %vm875_vm1, %v856_v34  ;;  %v2481_v34 = vunpack.c.h.bf16 %v2502_v11 }
 0x161   : > { %2348 = vmatmul.msk.f32.gmra.mxu1 %vm875_vm1, %v841_v36 }
 0x16d   : > { %v741_v39 = vpop.f32.mrf.mxu2 }
 0x16e   : > { %v857_v40 = vmul.f32 %v2472_v38, %v741_v39  ;;  %v2452_v38 = vunpack.c.l.bf16 %v2495_v30 }
 0x16f   : > { %v696_v41 = vpop.f32.mrf.mxu0 }
 0x170   : > { %v842_v52 = vmul.f32 %v2441_v46, %v696_v41  ;;  %2364 = vmatmul.msk.f32.gmra.mxu3 %vm875_vm1, %v857_v40 }
 0x172   : > { %2349 = vmatmul.msk.f32.gmra.mxu1 %vm875_vm1, %v842_v52 }
 0x175   : > { %v744_v44 = vpop.f32.mrf.mxu2 }
 0x176   : > { %v858_v47 = vmul.f32 %v2473_v42, %v744_v44  ;;  %v3402_v44 = vld [vmem:[%s3314_s20 + $0x70] sm:$0xff]  }
 0x178   : > { %v699_v48 = vpop.f32.mrf.mxu0  ;;  %2365 = vmatmul.msk.f32.gmra.mxu3 %vm875_vm1, %v858_v47 }
 0x179   : > { %v843_v49 = vmul.f32 %v2444_v45, %v699_v48 }
 0x17b   : > { %2350 = vmatmul.msk.f32.gmra.mxu1 %vm875_vm1, %v843_v49 }
 0x186   : > { %v747_v53 = vpop.f32.mrf.mxu2 }
 0x187   : > { %v859_v56 = vmul.f32 %v2476_v51, %v747_v53 }
 0x189   : > { %v702_v57 = vpop.f32.mrf.mxu0  ;;  %2366 = vmatmul.msk.f32.gmra.mxu3 %vm875_vm1, %v859_v56 }
 0x18a   : > { %v844_v58 = vmul.f32 %v2445_v55, %v702_v57  ;;  %v2484_v55 = vunpack.c.l.bf16 %v3402_v44 }
 0x18c   : > { %2351 = vmatmul.msk.f32.gmra.mxu1 %vm875_vm1, %v844_v58 }
 0x191   : > { %v705_v63 = vpop.f32.mrf.mxu0 }
 0x192   : > { %v845_v2 = vmul.f32 %v2448_v60, %v705_v63  ;;  %v989_v3 = vpop.f32.mrf.mxu1 }
 0x193   : > { %v990_v4 = vadd.f32 %v3390_v61, %v989_v3 }
 0x194   : > { %2352 = vmatmul.msk.f32.gmra.mxu1 %vm875_vm1, %v845_v2 }
 0x195   : > { %v2374_v6 = vmul.f32 -1.442695, %v990_v4 }
 0x197   : > { %2667 = vpow2.f32 %v2374_v6  ;;  %v750_v8 = vpop.f32.mrf.mxu2  ;;  %v2453_v6 = vunpack.c.h.bf16 %v2495_v30 }
 0x198   : > { %v860_v9 = vmul.f32 %v2477_v5, %v750_v8 }
 0x19a   : > { %v992_v10 = vpop.f32.mrf.mxu1  ;;  %2367 = vmatmul.msk.f32.gmra.mxu3 %vm875_vm1, %v860_v9 }
 0x19b   : > { %v993_v12 = vadd.f32 %v3390_v61, %v992_v10 }
 0x19d   : > { %v2668_v13 = vpop.eup %2667  ;;  %v2375_v14 = vmul.f32 -1.442695, %v993_v12 }
 0x19e   : > { %v1181_v16 = vadd.f32 1.0, %v2668_v13 }
 0x19f   : > { %2669 = vpow2.f32 %v2375_v14 }
 0x1a0   : > { %2671 = vrcp.f32 %v1181_v16  ;;  %v753_v18 = vpop.f32.mrf.mxu2  ;;  %v1224_v25 = vand.u32 2147483648, %v1181_v16  ;;  %v1222_v28 = vand.u32 2147483647, %v1181_v16  ;;  %vm1218_vm4 = vweird.f32 %v1181_v16 }
 0x1a1   : > { %v861_v19 = vmul.f32 %v2480_v15, %v753_v18 }
 0x1a2   : > { %v708_v20 = vpop.f32.mrf.mxu0  ;;  %v1225_v35 = vor.u32 1.1754944e-38, %v1224_v25  ;;  %vm1223_vm6 = vcmp.eq.f32.partialorder %v1222_v28, 8.507059e+37 }
 0x1a3   : > { %v846_v21 = vmul.f32 %v2449_v17, %v708_v20  ;;  %2368 = vmatmul.msk.f32.gmra.mxu3 %vm875_vm1, %v861_v19 }
 0x1a5   : > { %v2670_v22 = vpop.eup %2669  ;;  %2353 = vmatmul.msk.f32.gmra.mxu1 %vm875_vm1, %v846_v21 }
 0x1a6   : > { %v2672_v1 = vpop.eup %2671  ;;  %v1182_v23 = vadd.f32 1.0, %v2670_v22 }
 0x1a7   : > { %v1214_v0 = vmul.f32 %v2672_v1, %v1181_v16  ;;  %vm1219_vm3 = vweird.f32 %v2672_v1 }
 0x1a8   : > { %2673 = vrcp.f32 %v1182_v23  ;;  %vm1220_vm5 = vmor %vm1218_vm4, %vm1219_vm3  ;;  %v1239_v42 = vand.u32 2147483648, %v1182_v23  ;;  %v1237_v47 = vand.u32 2147483647, %v1182_v23  ;;  %vm1233_vm8 = vweird.f32 %v1182_v23 }
 0x1a9   : > { %v1215_v24 = vsub.f32 1.0, %v1214_v0 }
 0x1aa   : > { %v1240_v56 = vor.u32 1.1754944e-38, %v1239_v42  ;;  %vm1238_vm10 = vcmp.eq.f32.partialorder %v1237_v47, 8.507059e+37 }
 0x1ab   : > { %v995_v26 = vpop.f32.mrf.mxu1  ;;  %v1216_v27 = vmul.f32 %v2672_v1, %v1215_v24 }
 0x1ac   : > { %v996_v29 = vadd.f32 %v3390_v61, %v995_v26 }
 0x1ad   : > { %v1217_v31 = vadd.f32 %v2672_v1, %v1216_v27  ;;  %v2496_v27 = vld [vmem:[%s3314_s20 + $0x38] sm:$0xff]  }
 0x1ae   : > { %v2674_v32 = vpop.eup %2673  ;;  %v2376_v33 = vmul.f32 -1.442695, %v996_v29 }
 0x1af   : > { %v1229_v36 = vmul.f32 %v2674_v32, %v1182_v23  ;;  %v1221_v37 = vsel %vm1220_vm5, %v2672_v1, %v1217_v31  ;;  %vm1234_vm7 = vweird.f32 %v2674_v32  ;;  %v2485_v23 = vunpack.c.h.bf16 %v3402_v44 }
 0x1b0   : > { %2675 = vpow2.f32 %v2376_v33  ;;  %v1226_v46 = vsel %vm1223_vm6, %v1225_v35, %v1221_v37  ;;  %vm1235_vm9 = vmor %vm1233_vm8, %vm1234_vm7 }
 0x1b1   : > { %v1230_v39 = vsub.f32 1.0, %v1229_v36  ;;  %v756_v40 = vpop.f32.mrf.mxu2  ;;  %v1693_v41 = vmul.f32 1.442695, %v1226_v46 }
 0x1b2   : > { %v862_v52 = vmul.f32 %v2481_v34, %v756_v40 }
 0x1b3   : > { %v711_v43 = vpop.f32.mrf.mxu0  ;;  %2677 = vpow2.f32 %v1693_v41  ;;  %v1231_v45 = vmul.f32 %v2674_v32, %v1230_v39 }
 0x1b4   : > { %v847_v48 = vmul.f32 %v2452_v38, %v711_v43  ;;  %v998_v49 = vpop.f32.mrf.mxu1  ;;  %2369 = vmatmul.msk.f32.gmra.mxu3 %vm875_vm1, %v862_v52 }
 0x1b5   : > { %v999_v50 = vadd.f32 %v3390_v61, %v998_v49  ;;  %v1232_v51 = vadd.f32 %v2674_v32, %v1231_v45 }
 0x1b6   : > { %v2676_v53 = vpop.eup %2675  ;;  %2354 = vmatmul.msk.f32.gmra.mxu1 %vm875_vm1, %v847_v48 }
 0x1b7   : > { %v1183_v57 = vadd.f32 1.0, %v2676_v53  ;;  %v2377_v58 = vmul.f32 -1.442695, %v999_v50  ;;  %v1236_v59 = vsel %vm1235_vm9, %v2674_v32, %v1232_v51  ;;  %v2456_v32 = vunpack.c.l.bf16 %v2496_v27 }
 0x1b8   : > { %v1241_v60 = vsel %vm1238_vm10, %v1240_v56, %v1236_v59  ;;  %v2457_v50 = vunpack.c.h.bf16 %v2496_v27 }
 0x1b9   : > { %v3408_v63 = vpop.eup %2677  ;;  %2679 = vrcp.f32 %v1183_v57  ;;  %v759_v2 = vpop.f32.mrf.mxu2  ;;  %v1695_v3 = vmul.f32 1.442695, %v1241_v60  ;;  %v1254_v18 = vand.u32 2147483648, %v1183_v57  ;;  %v1252_v20 = vand.u32 2147483647, %v1183_v57  ;;  %v2497_v60 = vld [vmem:[%s3314_s20 + $0x40] sm:$0xff]  }
 0x1ba   : > { %2681 = vpow2.f32 %v2377_v58  ;;  %v863_v4 = vmul.f32 %v2484_v55, %v759_v2  ;;  %v1757_v5 = vsel %vm875_vm1, %v3408_v63, 0.0  ;;  %vm1248_vm12 = vweird.f32 %v1183_v57  ;;  %v2504_v2 = vld [vmem:[%s3314_s20 + $0x78] sm:$0xff]  }
 0x1bb   : > { %1758 = vadd.xlane.f32.xlu1 %v1757_v5  ;;  %2683 = vpow2.f32 %v1695_v3  ;;  %v1255_v0 = vor.u32 1.1754944e-38, %v1254_v18  ;;  %vm1253_vm14 = vcmp.eq.f32.partialorder %v1252_v20, 8.507059e+37 }
 0x1bc   : > { %2370 = vmatmul.msk.f32.gmra.mxu3 %vm875_vm1, %v863_v4  ;;  %v850_v4 = vmul.f32 %v2457_v50, %v3332_v54 }
 0x1bd   : > { %v714_v8 = vpop.f32.mrf.mxu0 }
 0x1be   : > { %v848_v9 = vmul.f32 %v2453_v6, %v714_v8  ;;  %v2460_v8 = vunpack.c.l.bf16 %v2497_v60 }
 0x1bf   : > { %v2680_v10 = vpop.eup %2679 }
 0x1c0   : > { %v2682_v11 = vpop.eup %2681  ;;  %v1244_v12 = vmul.f32 %v2680_v10, %v1183_v57  ;;  %2355 = vmatmul.msk.f32.gmra.mxu1 %vm875_vm1, %v848_v9  ;;  %vm1249_vm11 = vweird.f32 %v2680_v10  ;;  %v2488_v9 = vunpack.c.l.bf16 %v2504_v2  ;;  %v851_v20 = vmul.f32 %v2460_v8, %v3338_v62 }
 0x1c1   : > { %v3414_v13 = vpop.eup %2683  ;;  %v1184_v14 = vadd.f32 1.0, %v2682_v11  ;;  %vm1250_vm13 = vmor %vm1248_vm12, %vm1249_vm11 }
 0x1c2   : > { %v1245_v15 = vsub.f32 1.0, %v1244_v12  ;;  %v3416_v16 = vpop.f32.mrf.mxu3  ;;  %v1760_v17 = vsel %vm875_vm1, %v3414_v13, 0.0  ;;  %v2461_v12 = vunpack.c.h.bf16 %v2497_v60 }
 0x1c3   : > { %2685 = vrcp.f32 %v1184_v14  ;;  %1761 = vadd.xlane.f32.xlu2 %v1760_v17  ;;  %v1267_v39 = vand.u32 2147483647, %v1184_v14  ;;  %v1269_v40 = vand.u32 2147483648, %v1184_v14  ;;  %vm1263_vm0 = vweird.f32 %v1184_v14 }
 0x1c4   : > { %v1246_v19 = vmul.f32 %v2680_v10, %v1245_v15  ;;  %v2489_v17 = vunpack.c.h.bf16 %v2504_v2  ;;  %v852_v27 = vmul.f32 %v2461_v12, %v3349_v7 }
 0x1c5   : > { %v1001_v21 = vpop.f32.mrf.mxu1  ;;  %v1270_v48 = vor.u32 1.1754944e-38, %v1269_v40  ;;  %vm1268_vm3 = vcmp.eq.f32.partialorder %v1267_v39, 8.507059e+37 }
 0x1c6   : > { %v1002_v22 = vadd.f32 %v3390_v61, %v1001_v21  ;;  %v1247_v1 = vadd.f32 %v2680_v10, %v1246_v19 }
 0x1c8   : > { %v2378_v24 = vmul.f32 -1.442695, %v1002_v22  ;;  %v1251_v25 = vsel %vm1250_vm13, %v2680_v10, %v1247_v1 }
 0x1c9   : > { %v2686_v26 = vpop.eup %2685  ;;  %v1256_v28 = vsel %vm1253_vm14, %v1255_v0, %v1251_v25 }
 0x1ca   : > { %v1259_v29 = vmul.f32 %v2686_v26, %v1184_v14  ;;  %2687 = vpow2.f32 %v2378_v24  ;;  %v762_v30 = vpop.f32.mrf.mxu2  ;;  %v1043_v31 = vpop.f32.mrf.mxu3  ;;  %v1697_v33 = vmul.f32 1.442695, %v1256_v28  ;;  %vm1264_vm15 = vweird.f32 %v2686_v26 }
 0x1cb   : > { %v864_v34 = vmul.f32 %v2485_v23, %v762_v30  ;;  %v1044_v35 = vadd.f32 %v3390_v61, %v1043_v31  ;;  %vm1265_vm2 = vmor %vm1263_vm0, %vm1264_vm15  ;;  %v866_v30 = vmul.f32 %v2489_v17, %v3416_v16 }
 0x1cc   : > { %v1260_v36 = vsub.f32 1.0, %v1259_v29  ;;  %2689 = vpow2.f32 %v1697_v33 }
 0x1cd   : > { %v2392_v37 = vmul.f32 -1.442695, %v1044_v35  ;;  %v717_v38 = vpop.f32.mrf.mxu0  ;;  %v1004_v46 = vpop.f32.mrf.mxu1  ;;  %2371 = vmatmul.msk.f32.gmra.mxu3 %vm875_vm1, %v864_v34 }
 0x1ce   : > { %v849_v41 = vmul.f32 %v2456_v32, %v717_v38  ;;  %v1005_v52 = vadd.f32 %v3390_v61, %v1004_v46  ;;  %v1261_v42 = vmul.f32 %v2686_v26, %v1260_v36 }
 0x1cf   : > { %2691 = vpow2.f32 %v2392_v37 }
 0x1d0   : > { %v2688_v43 = vpop.eup %2687  ;;  %v2379_v44 = vmul.f32 -1.442695, %v1005_v52  ;;  %2356 = vmatmul.msk.f32.gmra.mxu1 %vm875_vm1, %v849_v41  ;;  %v1262_v45 = vadd.f32 %v2686_v26, %v1261_v42 }
 0x1d1   : > { %v3427_v47 = vadd.f32 1.0, %v2688_v43 }
 0x1d2   : > { %v3429_v49 = vpop.eup %2689  ;;  %2693 = vpow2.f32 %v2379_v44  ;;  %v1046_v51 = vpop.f32.mrf.mxu3  ;;  %v1266_v53 = vsel %vm1265_vm2, %v2686_v26, %v1262_v45 }
 0x1d3   : > { %2695 = vrcp.f32 %v3427_v47  ;;  %v1047_v55 = vadd.f32 %v3390_v61, %v1046_v51  ;;  %v1763_v56 = vsel %vm875_vm1, %v3429_v49, 0.0  ;;  %v1271_v57 = vsel %vm1268_vm3, %v1270_v48, %v1266_v53 }
 0x1d4   : > { %1764 = vadd.xlane.f32.xlu0 %v1763_v56  ;;  %v1699_v58 = vmul.f32 1.442695, %v1271_v57  ;;  %v1282_v24 = vand.u32 2147483647, %v3427_v47  ;;  %v1284_v25 = vand.u32 2147483648, %v3427_v47  ;;  %vm1278_vm5 = vweird.f32 %v3427_v47 }
 0x1d5   : > { %v2692_v59 = vpop.eup %2691  ;;  %v2393_v3 = vmul.f32 -1.442695, %v1047_v55 }
 0x1d6   : > { %v3438_v5 = vadd.f32 1.0, %v2692_v59  ;;  %2697 = vpow2.f32 %v1699_v58  ;;  %vm1283_vm7 = vcmp.eq.f32.partialorder %v1282_v24, 8.507059e+37  ;;  %v1285_v16 = vor.u32 1.1754944e-38, %v1284_v25 }
 0x1d7   : > { %2699 = vpow2.f32 %v2393_v3 }
 0x1d8   : > { %v2694_v6 = vpop.eup %2693  ;;  %2701 = vrcp.f32 %v3438_v5  ;;  %2357 = vmatmul.msk.f32.gmra.mxu1 %vm875_vm1, %v850_v4  ;;  %v1494_v33 = vand.u32 2147483648, %v3438_v5  ;;  %v1492_v39 = vand.u32 2147483647, %v3438_v5  ;;  %vm1488_vm9 = vweird.f32 %v3438_v5 }
 0x1d9   : > { %v2696_v10 = vpop.eup %2695  ;;  %v3442_v11 = vadd.f32 1.0, %v2694_v6 }
 0x1da   : > { %v1274_v14 = vmul.f32 %v2696_v10, %v3427_v47  ;;  %v1049_v15 = vpop.f32.mrf.mxu3  ;;  %vm1279_vm4 = vweird.f32 %v2696_v10  ;;  %v1495_v44 = vor.u32 1.1754944e-38, %v1494_v33  ;;  %vm1493_vm12 = vcmp.eq.f32.partialorder %v1492_v39, 8.507059e+37 }
 0x1db   : > { %2703 = vrcp.f32 %v3442_v11  ;;  %v1050_v54 = vadd.f32 %v3390_v61, %v1049_v15  ;;  %v765_v18 = vpop.f32.mrf.mxu2  ;;  %vm1280_vm6 = vmor %vm1278_vm5, %vm1279_vm4  ;;  %v1297_v50 = vand.u32 2147483647, %v3442_v11  ;;  %v1299_v51 = vand.u32 2147483648, %v3442_v11 }
 0x1dc   : > { %v3447_v19 = vpop.eup %2697  ;;  %v1275_v21 = vsub.f32 1.0, %v1274_v14  ;;  %v865_v22 = vmul.f32 %v2488_v9, %v765_v18  ;;  %vm1293_vm13 = vweird.f32 %v3442_v11 }
 0x1dd   : > { %v2700_v1 = vpop.eup %2699  ;;  %v2394_v23 = vmul.f32 -1.442695, %v1050_v54  ;;  %v1766_v0 = vsel %vm875_vm1, %v3447_v19, 0.0  ;;  %vm1298_vm15 = vcmp.eq.f32.partialorder %v1297_v50, 8.507059e+37 }
 0x1de   : > { %v2702_v26 = vpop.eup %2701  ;;  %v3455_v28 = vadd.f32 1.0, %v2700_v1  ;;  %1767 = vadd.xlane.f32.xlu2 %v1766_v0  ;;  %v1007_v29 = vpop.f32.mrf.mxu1  ;;  %2372 = vmatmul.msk.f32.gmra.mxu3 %vm875_vm1, %v865_v22  ;;  %v1276_v62 = vmul.f32 %v2696_v10, %v1275_v21 }
 0x1df   : > { %v1484_v31 = vmul.f32 %v2702_v26, %v3438_v5  ;;  %2705 = vpow2.f32 %v2394_v23  ;;  %v1008_v32 = vadd.f32 %v3390_v61, %v1007_v29  ;;  %vm1489_vm8 = vweird.f32 %v2702_v26 }
 0x1e0   : > { %2707 = vrcp.f32 %v3455_v28  ;;  %2358 = vmatmul.msk.f32.gmra.mxu1 %vm875_vm1, %v851_v20  ;;  %v1277_v7 = vadd.f32 %v2696_v10, %v1276_v62  ;;  %vm1490_vm10 = vmor %vm1488_vm9, %vm1489_vm8  ;;  %v1300_v5 = vor.u32 1.1754944e-38, %v1299_v51  ;;  %v1507_v9 = vand.u32 2147483647, %v3455_v28 }
 0x1e1   : > { %v2704_v34 = vpop.eup %2703  ;;  %v1485_v35 = vsub.f32 1.0, %v1484_v31  ;;  %v2380_v36 = vmul.f32 -1.442695, %v1008_v32  ;;  %vm1503_vm2 = vweird.f32 %v3455_v28 }
 0x1e2   : > { %v1289_v37 = vmul.f32 %v2704_v34, %v3442_v11  ;;  %v1052_v38 = vpop.f32.mrf.mxu3  ;;  %v1281_v46 = vsel %vm1280_vm6, %v2696_v10, %v1277_v7  ;;  %vm1294_vm11 = vweird.f32 %v2704_v34  ;;  %v1509_v10 = vand.u32 2147483648, %v3455_v28 }
 0x1e3   : > { %2709 = vpow2.f32 %v2380_v36  ;;  %v1053_v40 = vadd.f32 %v3390_v61, %v1052_v38  ;;  %v1286_v41 = vsel %vm1283_vm7, %v1285_v16, %v1281_v46  ;;  %v1486_v52 = vmul.f32 %v2702_v26, %v1485_v35  ;;  %vm1295_vm14 = vmor %vm1293_vm13, %vm1294_vm11 }
 0x1e4   : > { %v1290_v42 = vsub.f32 1.0, %v1289_v37  ;;  %v1701_v43 = vmul.f32 1.442695, %v1286_v41  ;;  %v1510_v22 = vor.u32 1.1754944e-38, %v1509_v10  ;;  %vm1508_vm4 = vcmp.eq.f32.partialorder %v1507_v9, 8.507059e+37 }
 0x1e5   : > { %v2706_v45 = vpop.eup %2705  ;;  %v2395_v47 = vmul.f32 -1.442695, %v1053_v40  ;;  %v1487_v48 = vadd.f32 %v2702_v26, %v1486_v52 }
 0x1e6   : > { %v2708_v53 = vpop.eup %2707  ;;  %v3471_v55 = vadd.f32 1.0, %v2706_v45  ;;  %2373 = vmatmul.msk.f32.gmra.mxu3 %vm875_vm1, %v866_v30  ;;  %2711 = vpow2.f32 %v1701_v43  ;;  %v1291_v56 = vmul.f32 %v2704_v34, %v1290_v42 }
 0x1e7   : > { %v1499_v57 = vmul.f32 %v2708_v53, %v3455_v28  ;;  %2713 = vpow2.f32 %v2395_v47  ;;  %v1491_v58 = vsel %vm1490_vm10, %v2702_v26, %v1487_v48  ;;  %vm1504_vm0 = vweird.f32 %v2708_v53 }
 0x1e8   : > { %2715 = vrcp.f32 %v3471_v55  ;;  %2359 = vmatmul.msk.f32.gmra.mxu1 %vm875_vm1, %v852_v27  ;;  %v1496_v59 = vsel %vm1493_vm12, %v1495_v44, %v1491_v58  ;;  %v1292_v60 = vadd.f32 %v2704_v34, %v1291_v56  ;;  %vm1505_vm3 = vmor %vm1503_vm2, %vm1504_vm0  ;;  %v1522_v26 = vand.u32 2147483647, %v3471_v55 }
 0x1e9   : > { %v2710_v2 = vpop.eup %2709  ;;  %v1500_v3 = vsub.f32 1.0, %v1499_v57  ;;  %v1729_v4 = vmul.f32 1.442695, %v1496_v59  ;;  %v1524_v31 = vand.u32 2147483648, %v3471_v55  ;;  %vm1518_vm6 = vweird.f32 %v3471_v55 }
 0x1ea   : > { %v3479_v6 = vadd.f32 1.0, %v2710_v2  ;;  %v1296_v8 = vsel %vm1295_vm14, %v2704_v34, %v1292_v60  ;;  %vm3503_vm7 = vcmp.eq.f32.partialorder %v1522_v26, 8.507059e+37 }
 0x1eb   : > { %2717 = vpow2.f32 %v1729_v4  ;;  %v1301_v12 = vsel %vm1298_vm15, %v1300_v5, %v1296_v8  ;;  %v1501_v14 = vmul.f32 %v2708_v53, %v1500_v3  ;;  %v1525_v41 = vor.u32 1.1754944e-38, %v1524_v31 }
 0x1ec   : > { %v3483_v15 = vpop.eup %2711  ;;  %2719 = vrcp.f32 %v3479_v6  ;;  %v1703_v11 = vmul.f32 1.442695, %v1301_v12  ;;  %v1312_v52 = vand.u32 2147483647, %v3479_v6  ;;  %v1314_v42 = vand.u32 2147483648, %v3479_v6 }
 0x1ed   : > { %v2714_v17 = vpop.eup %2713  ;;  %v1769_v54 = vsel %vm875_vm1, %v3483_v15, 0.0  ;;  %v1502_v18 = vadd.f32 %v2708_v53, %v1501_v14  ;;  %vm1308_vm10 = vweird.f32 %v3479_v6 }
 0x1ee   : > { %v2716_v20 = vpop.eup %2715  ;;  %v3489_v21 = vadd.f32 1.0, %v2714_v17  ;;  %1770 = vadd.xlane.f32.xlu1 %v1769_v54  ;;  %2721 = vpow2.f32 %v1703_v11  ;;  %vm1313_vm12 = vcmp.eq.f32.partialorder %v1312_v52, 8.507059e+37  ;;  %v1315_v58 = vor.u32 1.1754944e-38, %v1314_v42 }
 0x1ef   : > { %v1514_v1 = vmul.f32 %v2716_v20, %v3471_v55  ;;  %v1010_v23 = vpop.f32.mrf.mxu1  ;;  %v1506_v0 = vsel %vm1505_vm3, %v2708_v53, %v1502_v18  ;;  %vm1519_vm5 = vweird.f32 %v2716_v20 }
 0x1f0   : > { %2723 = vrcp.f32 %v3489_v21  ;;  %v1011_v24 = vadd.f32 %v3390_v61, %v1010_v23  ;;  %v1511_v25 = vsel %vm1508_vm4, %v1510_v22, %v1506_v0  ;;  %vm1520_vm8 = vmor %vm1518_vm6, %vm1519_vm5  ;;  %v1537_v59 = vand.u32 2147483647, %v3489_v21 }
 0x1f1   : > { %v3495_v27 = vpop.eup %2717  ;;  %v1515_v28 = vsub.f32 1.0, %v1514_v1  ;;  %v1731_v29 = vmul.f32 1.442695, %v1511_v25  ;;  %v1539_v60 = vand.u32 2147483648, %v3489_v21  ;;  %vm1533_vm14 = vweird.f32 %v3489_v21 }
 0x1f2   : > { %v2720_v62 = vpop.eup %2719  ;;  %v2381_v30 = vmul.f32 -1.442695, %v1011_v24  ;;  %v1811_v37 = vsel %vm875_vm1, %v3495_v27, 0.0  ;;  %vm1538_vm0 = vcmp.eq.f32.partialorder %v1537_v59, 8.507059e+37 }
 0x1f3   : > { %v1304_v32 = vmul.f32 %v2720_v62, %v3479_v6  ;;  %v1055_v7 = vpop.f32.mrf.mxu3  ;;  %2725 = vpow2.f32 %v1731_v29  ;;  %v1516_v33 = vmul.f32 %v2716_v20, %v1515_v28  ;;  %vm1309_vm9 = vweird.f32 %v2720_v62 }
 0x1f4   : > { %v3499_v34 = vpop.eup %2721  ;;  %2727 = vpow2.f32 %v2381_v30  ;;  %v1056_v35 = vadd.f32 %v3390_v61, %v1055_v7  ;;  %vm1310_vm11 = vmor %vm1308_vm10, %vm1309_vm9  ;;  %v1540_v18 = vor.u32 1.1754944e-38, %v1539_v60 }
 0x1f5   : > { %v1305_v16 = vsub.f32 1.0, %v1304_v32  ;;  %v1772_v38 = vsel %vm875_vm1, %v3499_v34, 0.0  ;;  %v1517_v46 = vadd.f32 %v2716_v20, %v1516_v33 }
 0x1f6   : > { %v2724_v39 = vpop.eup %2723  ;;  %v2396_v40 = vmul.f32 -1.442695, %v1056_v35  ;;  %1812 = vadd.xlane.f32.xlu1 %v1811_v37  ;;  %1773 = vadd.xlane.f32.xlu2 %v1772_v38 }
 0x1f7   : > { %v1529_v43 = vmul.f32 %v2724_v39, %v3489_v21  ;;  %v1521_v44 = vsel %vm1520_vm8, %v2716_v20, %v1517_v46  ;;  %v1306_v45 = vmul.f32 %v2720_v62, %v1305_v16  ;;  %vm1534_vm13 = vweird.f32 %v2724_v39 }
 0x1f8   : > { %2729 = vpow2.f32 %v2396_v40  ;;  %v1013_v47 = vpop.f32.mrf.mxu1  ;;  %v1526_v48 = vsel %vm3503_vm7, %v1525_v41, %v1521_v44  ;;  %vm1535_vm15 = vmor %vm1533_vm14, %vm1534_vm13 }
 0x1f9   : > { %v3517_v50 = vpop.eup %2725  ;;  %v1530_v51 = vsub.f32 1.0, %v1529_v43  ;;  %v1014_v53 = vadd.f32 %v3390_v61, %v1013_v47  ;;  %v1733_v55 = vmul.f32 1.442695, %v1526_v48  ;;  %v1307_v56 = vadd.f32 %v2720_v62, %v1306_v45 }
 0x1fa   : > { %v2728_v57 = vpop.eup %2727  ;;  %v1814_v10 = vsel %vm875_vm1, %v3517_v50, 0.0 }
 0x1fb   : > { %v1188_v2 = vadd.f32 1.0, %v2728_v57  ;;  %v2382_v3 = vmul.f32 -1.442695, %v1014_v53  ;;  %v1058_v4 = vpop.f32.mrf.mxu3  ;;  %2731 = vpow2.f32 %v1733_v55  ;;  %v1311_v5 = vsel %vm1310_vm11, %v2720_v62, %v1307_v56 }
 0x1fc   : > { %v1059_v6 = vadd.f32 %v3390_v61, %v1058_v4  ;;  %v1316_v8 = vsel %vm1313_vm12, %v1315_v58, %v1311_v5  ;;  %v1531_v9 = vmul.f32 %v2724_v39, %v1530_v51 }
 0x1fd   : > { %2733 = vrcp.f32 %v1188_v2  ;;  %v1705_v12 = vmul.f32 1.442695, %v1316_v8  ;;  %v1327_v7 = vand.u32 2147483647, %v1188_v2  ;;  %v1329_v33 = vand.u32 2147483648, %v1188_v2 }
 0x1fe   : > { %v2730_v14 = vpop.eup %2729  ;;  %2735 = vpow2.f32 %v2382_v3  ;;  %v2397_v11 = vmul.f32 -1.442695, %v1059_v6  ;;  %1815 = vadd.xlane.f32.xlu2 %v1814_v10  ;;  %v1532_v17 = vadd.f32 %v2724_v39, %v1531_v9  ;;  %vm1323_vm3 = vweird.f32 %v1188_v2 }
 0x1ff   : > { %v1203_v54 = vadd.f32 1.0, %v2730_v14  ;;  %2737 = vpow2.f32 %v1705_v12  ;;  %vm1328_vm5 = vcmp.eq.f32.partialorder %v1327_v7, 8.507059e+37  ;;  %v1330_v40 = vor.u32 1.1754944e-38, %v1329_v33 }
 0x200   : > { %2739 = vpow2.f32 %v2397_v11  ;;  %v1536_v20 = vsel %vm1535_vm15, %v2724_v39, %v1532_v17 }
 0x201   : > { %v3526_v22 = vpop.eup %2731  ;;  %2741 = vrcp.f32 %v1203_v54  ;;  %v1541_v1 = vsel %vm1538_vm0, %v1540_v18, %v1536_v20  ;;  %v1552_v41 = vand.u32 2147483647, %v1203_v54  ;;  %v1554_v52 = vand.u32 2147483648, %v1203_v54 }
 0x202   : > { %v1817_v23 = vsel %vm875_vm1, %v3526_v22, 0.0  ;;  %v1735_v0 = vmul.f32 1.442695, %v1541_v1  ;;  %vm1548_vm7 = vweird.f32 %v1203_v54 }
 0x203   : > { %v2734_v24 = vpop.eup %2733  ;;  %1818 = vadd.xlane.f32.xlu0 %v1817_v23  ;;  %vm1553_vm9 = vcmp.eq.f32.partialorder %v1552_v41, 8.507059e+37  ;;  %v1555_v60 = vor.u32 1.1754944e-38, %v1554_v52 }
 0x204   : > { %v2736_v25 = vpop.eup %2735  ;;  %v1319_v26 = vmul.f32 %v2734_v24, %v1188_v2  ;;  %2743 = vpow2.f32 %v1735_v0  ;;  %vm1324_vm2 = vweird.f32 %v2734_v24 }
 0x205   : > { %v3530_v21 = vpop.eup %2737  ;;  %v3532_v28 = vadd.f32 1.0, %v2736_v25  ;;  %vm1325_vm4 = vmor %vm1323_vm3, %vm1324_vm2 }
 0x206   : > { %v2740_v29 = vpop.eup %2739  ;;  %v1320_v62 = vsub.f32 1.0, %v1319_v26  ;;  %v1775_v30 = vsel %vm875_vm1, %v3530_v21, 0.0 }
 0x207   : > { %v2742_v31 = vpop.eup %2741  ;;  %2745 = vrcp.f32 %v3532_v28  ;;  %v3537_v32 = vadd.f32 1.0, %v2740_v29  ;;  %1776 = vadd.xlane.f32.xlu1 %v1775_v30  ;;  %v1342_v2 = vand.u32 2147483647, %v3532_v28  ;;  %v1344_v9 = vand.u32 2147483648, %v3532_v28 }
 0x208   : > { %v1544_v35 = vmul.f32 %v2742_v31, %v1203_v54  ;;  %v1321_v36 = vmul.f32 %v2734_v24, %v1320_v62  ;;  %vm1549_vm6 = vweird.f32 %v2742_v31  ;;  %vm1338_vm11 = vweird.f32 %v3532_v28 }
 0x209   : > { %2747 = vrcp.f32 %v3537_v32  ;;  %v1016_v16 = vpop.f32.mrf.mxu1  ;;  %vm1550_vm8 = vmor %vm1548_vm7, %vm1549_vm6  ;;  %v1567_v17 = vand.u32 2147483647, %v3537_v32  ;;  %v1569_v54 = vand.u32 2147483648, %v3537_v32  ;;  %vm1343_vm14 = vcmp.eq.f32.partialorder %v1342_v2, 8.507059e+37 }
 0x20a   : > { %v3540_v37 = vpop.eup %2743  ;;  %v1545_v38 = vsub.f32 1.0, %v1544_v35  ;;  %v1017_v46 = vadd.f32 %v3390_v61, %v1016_v16  ;;  %v1322_v39 = vadd.f32 %v2734_v24, %v1321_v36  ;;  %vm1563_vm15 = vweird.f32 %v3537_v32 }
 0x20b   : > { %v1820_v51 = vsel %vm875_vm1, %v3540_v37, 0.0  ;;  %vm1568_vm2 = vcmp.eq.f32.partialorder %v1567_v17, 8.507059e+37 }
 0x20c   : > { %v2383_v42 = vmul.f32 -1.442695, %v1017_v46  ;;  %v1061_v43 = vpop.f32.mrf.mxu3  ;;  %v1326_v44 = vsel %vm1325_vm4, %v2734_v24, %v1322_v39  ;;  %v1546_v45 = vmul.f32 %v2742_v31, %v1545_v38  ;;  %v1345_v24 = vor.u32 1.1754944e-38, %v1344_v9 }
 0x20d   : > { %v2746_v47 = vpop.eup %2745  ;;  %v1062_v48 = vadd.f32 %v3390_v61, %v1061_v43  ;;  %v1331_v53 = vsel %vm1328_vm5, %v1330_v40, %v1326_v44 }
 0x20e   : > { %v1334_v55 = vmul.f32 %v2746_v47, %v3532_v28  ;;  %2749 = vpow2.f32 %v2383_v42  ;;  %v1707_v56 = vmul.f32 1.442695, %v1331_v53  ;;  %v1547_v57 = vadd.f32 %v2742_v31, %v1546_v45 }
 0x20f   : > { %v2748_v58 = vpop.eup %2747  ;;  %v2398_v59 = vmul.f32 -1.442695, %v1062_v48  ;;  %1821 = vadd.xlane.f32.xlu1 %v1820_v51  ;;  %vm1339_vm10 = vweird.f32 %v2746_v47 }
 0x210   : > { %v1335_v3 = vsub.f32 1.0, %v1334_v55  ;;  %v1559_v4 = vmul.f32 %v2748_v58, %v3537_v32  ;;  %2751 = vpow2.f32 %v1707_v56  ;;  %v1551_v5 = vsel %vm1550_vm8, %v2742_v31, %v1547_v57  ;;  %vm1340_vm13 = vmor %vm1338_vm11, %vm1339_vm10 }
 0x211   : > { %2753 = vpow2.f32 %v2398_v59  ;;  %v1019_v6 = vpop.f32.mrf.mxu1  ;;  %v1556_v8 = vsel %vm1553_vm9, %v1555_v60, %v1551_v5  ;;  %vm1564_vm12 = vweird.f32 %v2748_v58  ;;  %v1570_v31 = vor.u32 1.1754944e-38, %v1569_v54 }
 0x212   : > { %v1560_v10 = vsub.f32 1.0, %v1559_v4  ;;  %v1020_v12 = vadd.f32 %v3390_v61, %v1019_v6  ;;  %v1737_v14 = vmul.f32 1.442695, %v1556_v8  ;;  %v1336_v11 = vmul.f32 %v2746_v47, %v1335_v3  ;;  %vm1565_vm0 = vmor %vm1563_vm15, %vm1564_vm12 }
 0x214   : > { %v2750_v18 = vpop.eup %2749  ;;  %v2384_v20 = vmul.f32 -1.442695, %v1020_v12  ;;  %v1337_v1 = vadd.f32 %v2746_v47, %v1336_v11  ;;  %v1561_v23 = vmul.f32 %v2748_v58, %v1560_v10  ;;  %2755 = vpow2.f32 %v1737_v14 }
 0x215   : > { %v1190_v0 = vadd.f32 1.0, %v2750_v18 }
 0x216   : > { %v3555_v25 = vpop.eup %2751  ;;  %2757 = vpow2.f32 %v2384_v20  ;;  %v1341_v26 = vsel %vm1340_vm13, %v2746_v47, %v1337_v1  ;;  %v1562_v28 = vadd.f32 %v2748_v58, %v1561_v23 }
 0x217   : > { %v2754_v29 = vpop.eup %2753  ;;  %2759 = vrcp.f32 %v1190_v0  ;;  %v1778_v62 = vsel %vm875_vm1, %v3555_v25, 0.0  ;;  %v1346_v30 = vsel %vm1343_vm14, %v1345_v24, %v1341_v26  ;;  %v1357_v47 = vand.u32 2147483647, %v1190_v0 }
 0x218   : > { %v1205_v7 = vadd.f32 1.0, %v2754_v29  ;;  %1779 = vadd.xlane.f32.xlu2 %v1778_v62  ;;  %v1709_v33 = vmul.f32 1.442695, %v1346_v30  ;;  %v1566_v35 = vsel %vm1565_vm0, %v2748_v58, %v1562_v28  ;;  %v1359_v53 = vand.u32 2147483648, %v1190_v0 }
 0x219   : > { %v1571_v36 = vsel %vm1568_vm2, %v1570_v31, %v1566_v35  ;;  %vm1353_vm4 = vweird.f32 %v1190_v0  ;;  %vm3574_vm5 = vcmp.eq.f32.partialorder %v1357_v47, 8.507059e+37 }
 0x21a   : > { %2761 = vrcp.f32 %v1205_v7  ;;  %v3561_v16 = vpop.eup %2755  ;;  %v1739_v38 = vmul.f32 1.442695, %v1571_v36  ;;  %v1582_v55 = vand.u32 2147483647, %v1205_v7  ;;  %v1584_v56 = vand.u32 2147483648, %v1205_v7 }
 0x21b   : > { %2763 = vpow2.f32 %v1709_v33  ;;  %v1823_v42 = vsel %vm875_vm1, %v3561_v16, 0.0  ;;  %vm1578_vm6 = vweird.f32 %v1205_v7  ;;  %v1360_v8 = vor.u32 1.1754944e-38, %v1359_v53 }
 0x21c   : > { %v2758_v32 = vpop.eup %2757  ;;  %vm3581_vm9 = vcmp.eq.f32.partialorder %v1582_v55, 8.507059e+37  ;;  %v1585_v54 = vor.u32 1.1754944e-38, %v1584_v56 }
 0x21d   : > { %v2760_v46 = vpop.eup %2759  ;;  %v3563_v39 = vadd.f32 1.0, %v2758_v32  ;;  %v1064_v40 = vpop.f32.mrf.mxu3 }
 0x21e   : > { %v1349_v41 = vmul.f32 %v2760_v46, %v1190_v0  ;;  %v1065_v52 = vadd.f32 %v3390_v61, %v1064_v40  ;;  %vm1354_vm3 = vweird.f32 %v2760_v46 }
 0x21f   : > { %2765 = vrcp.f32 %v3563_v39  ;;  %vm1355_vm7 = vmor %vm1353_vm4, %vm1354_vm3  ;;  %v1372_v26 = vand.u32 2147483647, %v3563_v39  ;;  %v1374_v28 = vand.u32 2147483648, %v3563_v39  ;;  %vm1368_vm12 = vweird.f32 %v3563_v39 }
 0x220   : > { %v2762_v43 = vpop.eup %2761  ;;  %v1350_v44 = vsub.f32 1.0, %v1349_v41  ;;  %v2399_v45 = vmul.f32 -1.442695, %v1065_v52  ;;  %1824 = vadd.xlane.f32.xlu2 %v1823_v42  ;;  %2767 = vpow2.f32 %v1739_v38 }
 0x221   : > { %v3569_v48 = vpop.eup %2763  ;;  %v1574_v51 = vmul.f32 %v2762_v43, %v1205_v7  ;;  %vm1579_vm8 = vweird.f32 %v2762_v43  ;;  %v1375_v32 = vor.u32 1.1754944e-38, %v1374_v28  ;;  %vm1373_vm14 = vcmp.eq.f32.partialorder %v1372_v26, 8.507059e+37 }
 0x222   : > { %2769 = vpow2.f32 %v2399_v45  ;;  %v1781_v57 = vsel %vm875_vm1, %v3569_v48, 0.0  ;;  %v1022_v58 = vpop.f32.mrf.mxu1  ;;  %v1351_v59 = vmul.f32 %v2760_v46, %v1350_v44  ;;  %vm1580_vm10 = vmor %vm1578_vm6, %vm1579_vm8 }
 0x223   : > { %v1575_v60 = vsub.f32 1.0, %v1574_v51  ;;  %1782 = vadd.xlane.f32.xlu0 %v1781_v57  ;;  %v1023_v2 = vadd.f32 %v3390_v61, %v1022_v58  ;;  %v3616_v57 = vld [vmem:[%s4084_s4] ss:$0 sm:$0xff] }
 0x224   : > { %v1352_v3 = vadd.f32 %v2760_v46, %v1351_v59 }
 0x225   : > { %v2766_v5 = vpop.eup %2765  ;;  %v2385_v6 = vmul.f32 -1.442695, %v1023_v2  ;;  %v1576_v9 = vmul.f32 %v2762_v43, %v1575_v60 }
 0x226   : > { %v3578_v10 = vpop.eup %2767  ;;  %v1364_v12 = vmul.f32 %v2766_v5, %v3563_v39  ;;  %v1067_v14 = vpop.f32.mrf.mxu3  ;;  %v1356_v11 = vsel %vm1355_vm7, %v2760_v46, %v1352_v3  ;;  %vm1369_vm11 = vweird.f32 %v2766_v5 }
 0x227   : > { %2771 = vpow2.f32 %v2385_v6  ;;  %v1068_v18 = vadd.f32 %v3390_v61, %v1067_v14  ;;  %v1361_v20 = vsel %vm3574_vm5, %v1360_v8, %v1356_v11  ;;  %v1577_v1 = vadd.f32 %v2762_v43, %v1576_v9  ;;  %vm1370_vm13 = vmor %vm1368_vm12, %vm1369_vm11 }
 0x228   : > { %v2770_v23 = vpop.eup %2769  ;;  %v1365_v0 = vsub.f32 1.0, %v1364_v12  ;;  %v1711_v24 = vmul.f32 1.442695, %v1361_v20  ;;  %v1826_v30 = vsel %vm875_vm1, %v3578_v10, 0.0 }
 0x229   : > { %v3591_v29 = vadd.f32 1.0, %v2770_v23  ;;  %v2400_v62 = vmul.f32 -1.442695, %v1068_v18  ;;  %v1581_v61 = vsel %vm1580_vm10, %v2762_v43, %v1577_v1 }
 0x22a   : > { %2773 = vpow2.f32 %v1711_v24  ;;  %v1586_v31 = vsel %vm3581_vm9, %v1585_v54, %v1581_v61  ;;  %v1366_v33 = vmul.f32 %v2766_v5, %v1365_v0 }
 0x22b   : > { %2775 = vrcp.f32 %v3591_v29  ;;  %1827 = vadd.xlane.f32.xlu0 %v1826_v30  ;;  %v1741_v7 = vmul.f32 1.442695, %v1586_v31  ;;  %v1599_v53 = vand.u32 2147483648, %v3591_v29  ;;  %v1597_v60 = vand.u32 2147483647, %v3591_v29 }
 0x22c   : > { %2777 = vpow2.f32 %v2400_v62  ;;  %v1367_v35 = vadd.f32 %v2766_v5, %v1366_v33  ;;  %vm1593_vm0 = vweird.f32 %v3591_v29 }
 0x22d   : > { %v2772_v36 = vpop.eup %2771  ;;  %2779 = vpow2.f32 %v1741_v7  ;;  %v1600_v12 = vor.u32 1.1754944e-38, %v1599_v53  ;;  %vm1598_vm3 = vcmp.eq.f32.partialorder %v1597_v60, 8.507059e+37 }
 0x22e   : > { %v3599_v38 = vadd.f32 1.0, %v2772_v36  ;;  %v1759_v46 = vpop.xlane.xlu1 %1758  ;;  %v1371_v40 = vsel %vm1370_vm13, %v2766_v5, %v1367_v35 }
 0x22f   : > { %2781 = vrcp.f32 %v1759_v46  ;;  %v1376_v41 = vsel %vm1373_vm14, %v1375_v32, %v1371_v40 }
 0x230   : > { %v3602_v52 = vpop.eup %2773  ;;  %2783 = vrcp.f32 %v3599_v38  ;;  %v1713_v42 = vmul.f32 1.442695, %v1376_v41  ;;  %v1387_v17 = vand.u32 2147483647, %v3599_v38  ;;  %v1389_v1 = vand.u32 2147483648, %v3599_v38 }
 0x231   : > { %v2776_v43 = vpop.eup %2775  ;;  %v1784_v39 = vsel %vm875_vm1, %v3602_v52, 0.0  ;;  %vm1383_vm5 = vweird.f32 %v3599_v38 }
 0x232   : > { %v2778_v44 = vpop.eup %2777  ;;  %v1589_v45 = vmul.f32 %v2776_v43, %v3591_v29  ;;  %1785 = vadd.xlane.f32.xlu1 %v1784_v39  ;;  %2785 = vpow2.f32 %v1713_v42  ;;  %vm1594_vm15 = vweird.f32 %v2776_v43  ;;  %vm3640_vm6 = vcmp.eq.f32.partialorder %v1387_v17, 8.507059e+37 }
 0x233   : > { %v3608_v47 = vadd.f32 1.0, %v2778_v44  ;;  %v1025_v51 = vpop.f32.mrf.mxu1  ;;  %v3611_v55 = vpop.eup %2779  ;;  %vm1595_vm2 = vmor %vm1593_vm0, %vm1594_vm15  ;;  %v1390_v7 = vor.u32 1.1754944e-38, %v1389_v1 }
 0x234   : > { %v1590_v56 = vsub.f32 1.0, %v1589_v45  ;;  %v1026_v58 = vadd.f32 %v3616_v57, %v1025_v51  ;;  %v1829_v18 = vsel %vm875_vm1, %v3611_v55, 0.0 }
 0x235   : > { %v2782_v59 = vpop.eup %2781  ;;  %2787 = vrcp.f32 %v3608_v47  ;;  %v1612_v35 = vand.u32 2147483647, %v3608_v47  ;;  %vm1608_vm9 = vweird.f32 %v3608_v47 }
 0x236   : > { %v2784_v2 = vpop.eup %2783  ;;  %v1885_v3 = vmul.f32 %v2782_v59, %v3408_v63  ;;  %v2386_v4 = vmul.f32 -1.442695, %v1026_v58  ;;  %v1762_v5 = vpop.xlane.xlu2 %1761  ;;  %v1591_v6 = vmul.f32 %v2776_v43, %v1590_v56 }
 0x237   : > { %v1379_v8 = vmul.f32 %v2784_v2, %v3599_v38  ;;  %2789 = vrcp.f32 %v1762_v5  ;;  %v1070_v9 = vpop.f32.mrf.mxu3  ;;  %vm1384_vm4 = vweird.f32 %v2784_v2  ;;  %vm1613_vm11 = vcmp.eq.f32.partialorder %v1612_v35, 8.507059e+37 }
 0x238   : > { %v3624_v14 = vpop.eup %2785  ;;  %1917 = vst.msk [vmem:[%s3626_s6] sm:$0xff] %vm875_vm1, %v1885_v3  ;;  %2791 = vpow2.f32 %v2386_v4  ;;  %v1071_v63 = vadd.f32 %v3616_v57, %v1070_v9  ;;  %v1592_v11 = vadd.f32 %v2776_v43, %v1591_v6  ;;  %vm1385_vm7 = vmor %vm1383_vm5, %vm1384_vm4 }
 0x239   : > { %v1380_v54 = vsub.f32 1.0, %v1379_v8  ;;  %v1787_v20 = vsel %vm875_vm1, %v3624_v14, 0.0 }
 0x23a   : > { %v2401_v23 = vmul.f32 -1.442695, %v1071_v63  ;;  %1830 = vadd.xlane.f32.xlu1 %v1829_v18  ;;  %1788 = vadd.xlane.f32.xlu2 %v1787_v20  ;;  %v1596_v0 = vsel %vm1595_vm2, %v2776_v43, %v1592_v11  ;;  %v1614_v43 = vand.u32 2147483648, %v3608_v47 }
 0x23b   : > { %v2788_v24 = vpop.eup %2787  ;;  %v1601_v26 = vsel %vm1598_vm3, %v1600_v12, %v1596_v0  ;;  %v1381_v28 = vmul.f32 %v2784_v2, %v1380_v54 }
 0x23c   : > { %v1604_v29 = vmul.f32 %v2788_v24, %v3608_v47  ;;  %2793 = vpow2.f32 %v2401_v23  ;;  %v1743_v62 = vmul.f32 1.442695, %v1601_v26  ;;  %vm1609_vm8 = vweird.f32 %v2788_v24 }
 0x23d   : > { %v2790_v30 = vpop.eup %2789  ;;  %v1028_v61 = vpop.f32.mrf.mxu1  ;;  %v1382_v31 = vadd.f32 %v2784_v2, %v1381_v28  ;;  %vm1610_vm10 = vmor %vm1608_vm9, %vm1609_vm8  ;;  %v1615_v60 = vor.u32 1.1754944e-38, %v1614_v43 }
 0x23e   : > { %v2792_v36 = vpop.eup %2791  ;;  %v1605_v32 = vsub.f32 1.0, %v1604_v29  ;;  %v1886_v46 = vmul.f32 %v2790_v30, %v3414_v13  ;;  %v1029_v40 = vadd.f32 %v3616_v57, %v1028_v61  ;;  %2795 = vpow2.f32 %v1743_v62 }
 0x23f   : > { %v1193_v38 = vadd.f32 1.0, %v2792_v36  ;;  %v1073_v41 = vpop.f32.mrf.mxu3  ;;  %v1386_v42 = vsel %vm1385_vm7, %v2784_v2, %v1382_v31 }
 0x240   : > { %1918 = vst.msk [vmem:[%s3626_s6 + $0x8] sm:$0xff] %vm875_vm1, %v1886_v46  ;;  %v2387_v39 = vmul.f32 -1.442695, %v1029_v40  ;;  %v1074_v44 = vadd.f32 %v3616_v57, %v1073_v41  ;;  %v1391_v45 = vsel %vm3640_vm6, %v1390_v7, %v1386_v42  ;;  %v1606_v13 = vmul.f32 %v2788_v24, %v1605_v32 }
 0x241   : > { %2797 = vrcp.f32 %v1193_v38  ;;  %v1715_v51 = vmul.f32 1.442695, %v1391_v45  ;;  %v1402_v20 = vand.u32 2147483647, %v1193_v38  ;;  %v1404_v0 = vand.u32 2147483648, %v1193_v38 }
 0x242   : > { %v2794_v53 = vpop.eup %2793  ;;  %2799 = vpow2.f32 %v2387_v39  ;;  %v2402_v56 = vmul.f32 -1.442695, %v1074_v44  ;;  %v1607_v58 = vadd.f32 %v2788_v24, %v1606_v13  ;;  %vm1398_vm13 = vweird.f32 %v1193_v38 }
 0x243   : > { %v3655_v59 = vadd.f32 1.0, %v2794_v53  ;;  %2801 = vpow2.f32 %v1715_v51  ;;  %vm3676_vm14 = vcmp.eq.f32.partialorder %v1402_v20, 8.507059e+37  ;;  %v1405_v36 = vor.u32 1.1754944e-38, %v1404_v0 }
 0x244   : > { %v3658_v2 = vpop.eup %2795  ;;  %2803 = vpow2.f32 %v2402_v56  ;;  %v1611_v3 = vsel %vm1610_vm10, %v2788_v24, %v1607_v58 }
 0x245   : > { %2805 = vrcp.f32 %v3655_v59  ;;  %v1832_v4 = vsel %vm875_vm1, %v3658_v2, 0.0  ;;  %v1616_v5 = vsel %vm1613_vm11, %v1615_v60, %v1611_v3  ;;  %v1627_v29 = vand.u32 2147483647, %v3655_v59 }
 0x246   : > { %1833 = vadd.xlane.f32.xlu2 %v1832_v4  ;;  %v1745_v6 = vmul.f32 1.442695, %v1616_v5  ;;  %vm1623_vm0 = vweird.f32 %v3655_v59  ;;  %v1629_v32 = vand.u32 2147483648, %v3655_v59 }
 0x247   : > { %v2798_v47 = vpop.eup %2797  ;;  %v1765_v8 = vpop.xlane.xlu0 %1764  ;;  %vm3692_vm3 = vcmp.eq.f32.partialorder %v1627_v29, 8.507059e+37 }
 0x248   : > { %v2800_v9 = vpop.eup %2799  ;;  %v1394_v12 = vmul.f32 %v2798_v47, %v1193_v38  ;;  %2807 = vrcp.f32 %v1765_v8  ;;  %vm1399_vm12 = vweird.f32 %v2798_v47  ;;  %v1630_v60 = vor.u32 1.1754944e-38, %v1629_v32 }
 0x249   : > { %v3663_v63 = vpop.eup %2801  ;;  %v3665_v11 = vadd.f32 1.0, %v2800_v9  ;;  %2809 = vpow2.f32 %v1745_v6  ;;  %vm1400_vm15 = vmor %vm1398_vm13, %vm1399_vm12 }
 0x24a   : > { %v2804_v17 = vpop.eup %2803  ;;  %v1395_v54 = vsub.f32 1.0, %v1394_v12  ;;  %v1790_v18 = vsel %vm875_vm1, %v3663_v63, 0.0 }
 0x24b   : > { %v2806_v1 = vpop.eup %2805  ;;  %2811 = vrcp.f32 %v3665_v11  ;;  %v3670_v23 = vadd.f32 1.0, %v2804_v17  ;;  %1791 = vadd.xlane.f32.xlu0 %v1790_v18  ;;  %v1417_v3 = vand.u32 2147483647, %v3665_v11  ;;  %v1419_v9 = vand.u32 2147483648, %v3665_v11 }
 0x24c   : > { %v1619_v24 = vmul.f32 %v2806_v1, %v3655_v59  ;;  %v1396_v26 = vmul.f32 %v2798_v47, %v1395_v54  ;;  %vm1624_vm2 = vweird.f32 %v2806_v1  ;;  %vm1413_vm6 = vweird.f32 %v3665_v11 }
 0x24d   : > { %2813 = vrcp.f32 %v3670_v23  ;;  %v1031_v28 = vpop.f32.mrf.mxu1  ;;  %vm1625_vm4 = vmor %vm1623_vm0, %vm1624_vm2  ;;  %vm3707_vm7 = vcmp.eq.f32.partialorder %v1417_v3, 8.507059e+37  ;;  %vm1638_vm8 = vweird.f32 %v3670_v23  ;;  %v1644_v20 = vand.u32 2147483648, %v3670_v23 }
 0x24e   : > { %v2808_v62 = vpop.eup %2807  ;;  %v1620_v30 = vsub.f32 1.0, %v1619_v24  ;;  %v1032_v61 = vadd.f32 %v3616_v57, %v1031_v28  ;;  %v1397_v31 = vadd.f32 %v2798_v47, %v1396_v26 }
 0x24f   : > { %v3680_v7 = vpop.eup %2809  ;;  %v1887_v35 = vmul.f32 %v2808_v62, %v3429_v49  ;;  %v1642_v62 = vand.u32 2147483647, %v3670_v23 }
 0x250   : > { %v2388_v46 = vmul.f32 -1.442695, %v1032_v61  ;;  %v1076_v40 = vpop.f32.mrf.mxu3  ;;  %v1401_v38 = vsel %vm1400_vm15, %v2798_v47, %v1397_v31  ;;  %v1621_v41 = vmul.f32 %v2806_v1, %v1620_v30  ;;  %v1835_v49 = vsel %vm875_vm1, %v3680_v7, 0.0 }
 0x251   : > { %v2812_v42 = vpop.eup %2811  ;;  %1919 = vst.msk [vmem:[%s3626_s6 + $0x10] sm:$0xff] %vm875_vm1, %v1887_v35  ;;  %v1768_v43 = vpop.xlane.xlu2 %1767  ;;  %v1077_v39 = vadd.f32 %v3616_v57, %v1076_v40  ;;  %v1406_v44 = vsel %vm3676_vm14, %v1405_v36, %v1401_v38  ;;  %v1645_v40 = vor.u32 1.1754944e-38, %v1644_v20  ;;  %vm1643_vm12 = vcmp.eq.f32.partialorder %v1642_v62, 8.507059e+37 }
 0x252   : > { %v1409_v13 = vmul.f32 %v2812_v42, %v3665_v11  ;;  %2815 = vpow2.f32 %v2388_v46  ;;  %v1717_v51 = vmul.f32 1.442695, %v1406_v44  ;;  %v1622_v53 = vadd.f32 %v2806_v1, %v1621_v41 }
 0x253   : > { %v2814_v56 = vpop.eup %2813  ;;  %2817 = vrcp.f32 %v1768_v43  ;;  %v2403_v58 = vmul.f32 -1.442695, %v1077_v39  ;;  %1836 = vadd.xlane.f32.xlu0 %v1835_v49  ;;  %vm1414_vm5 = vweird.f32 %v2812_v42  ;;  %v1420_v11 = vor.u32 1.1754944e-38, %v1419_v9 }
 0x254   : > { %v1410_v4 = vsub.f32 1.0, %v1409_v13  ;;  %v1634_v5 = vmul.f32 %v2814_v56, %v3670_v23  ;;  %2819 = vpow2.f32 %v1717_v51  ;;  %v1626_v6 = vsel %vm1625_vm4, %v2806_v1, %v1622_v53  ;;  %vm1415_vm10 = vmor %vm1413_vm6, %vm1414_vm5 }
 0x255   : > { %2821 = vpow2.f32 %v2403_v58  ;;  %v1034_v47 = vpop.f32.mrf.mxu1  ;;  %v1631_v8 = vsel %vm3692_vm3, %v1630_v60, %v1626_v6  ;;  %vm1639_vm9 = vweird.f32 %v2814_v56 }
 0x256   : > { %v1635_v12 = vsub.f32 1.0, %v1634_v5  ;;  %v1035_v59 = vadd.f32 %v3616_v57, %v1034_v47  ;;  %v1747_v17 = vmul.f32 1.442695, %v1631_v8  ;;  %v1411_v54 = vmul.f32 %v2812_v42, %v1410_v4  ;;  %vm1640_vm11 = vmor %vm1638_vm8, %vm1639_vm9 }
 0x258   : > { %v2816_v1 = vpop.eup %2815  ;;  %v2389_v0 = vmul.f32 -1.442695, %v1035_v59  ;;  %v1412_v24 = vadd.f32 %v2812_v42, %v1411_v54  ;;  %v1636_v26 = vmul.f32 %v2814_v56, %v1635_v12  ;;  %2823 = vpow2.f32 %v1747_v17 }
 0x259   : > { %v2818_v28 = vpop.eup %2817  ;;  %v3713_v29 = vadd.f32 1.0, %v2816_v1 }
 0x25a   : > { %v3717_v30 = vpop.eup %2819  ;;  %v1888_v61 = vmul.f32 %v2818_v28, %v3447_v19  ;;  %2825 = vpow2.f32 %v2389_v0  ;;  %v1416_v31 = vsel %vm1415_vm10, %v2812_v42, %v1412_v24  ;;  %v1637_v33 = vadd.f32 %v2814_v56, %v1636_v26 }
 0x25b   : > { %v2822_v35 = vpop.eup %2821  ;;  %2827 = vrcp.f32 %v3713_v29  ;;  %v1793_v36 = vsel %vm875_vm1, %v3717_v30, 0.0  ;;  %v1421_v32 = vsel %vm3707_vm7, %v1420_v11, %v1416_v31  ;;  %v1432_v47 = vand.u32 2147483647, %v3713_v29 }
 0x25c   : > { %1920 = vst.msk [vmem:[%s3626_s6 + $0x18] sm:$0xff] %vm875_vm1, %v1888_v61  ;;  %1794 = vadd.xlane.f32.xlu1 %v1793_v36  ;;  %v1719_v19 = vmul.f32 1.442695, %v1421_v32  ;;  %v1641_v46 = vsel %vm1640_vm11, %v2814_v56, %v1637_v33  ;;  %v3730_v38 = vadd.f32 1.0, %v2822_v35  ;;  %v1434_v8 = vand.u32 2147483648, %v3713_v29 }
 0x25d   : > { %v1037_v41 = vpop.f32.mrf.mxu1  ;;  %v1646_v43 = vsel %vm1643_vm12, %v1645_v40, %v1641_v46  ;;  %vm1428_vm14 = vweird.f32 %v3713_v29  ;;  %vm1433_vm0 = vcmp.eq.f32.partialorder %v1432_v47, 8.507059e+37 }
 0x25e   : > { %v1038_v42 = vadd.f32 %v3616_v57, %v1037_v41  ;;  %v3733_v39 = vpop.eup %2823  ;;  %2829 = vpow2.f32 %v1719_v19  ;;  %v1749_v53 = vmul.f32 1.442695, %v1646_v43  ;;  %v1435_v28 = vor.u32 1.1754944e-38, %v1434_v8 }
 0x25f   : > { %2831 = vrcp.f32 %v3730_v38  ;;  %v1838_v60 = vsel %vm875_vm1, %v3733_v39, 0.0  ;;  %vm1653_vm7 = vweird.f32 %v3730_v38 }
 0x260   : > { %v2826_v49 = vpop.eup %2825  ;;  %v2390_v44 = vmul.f32 -1.442695, %v1038_v42 }
 0x261   : > { %v2828_v23 = vpop.eup %2827  ;;  %v3736_v45 = vadd.f32 1.0, %v2826_v49  ;;  %v1079_v13 = vpop.f32.mrf.mxu3 }
 0x262   : > { %v1771_v51 = vpop.xlane.xlu1 %1770  ;;  %v1424_v56 = vmul.f32 %v2828_v23, %v3713_v29  ;;  %2833 = vpow2.f32 %v2390_v44  ;;  %v1080_v58 = vadd.f32 %v3616_v57, %v1079_v13  ;;  %vm1429_vm13 = vweird.f32 %v2828_v23 }
 0x263   : > { %2835 = vrcp.f32 %v3736_v45  ;;  %vm1430_vm15 = vmor %vm1428_vm14, %vm1429_vm13  ;;  %v1449_v43 = vand.u32 2147483648, %v3736_v45  ;;  %vm1443_vm3 = vweird.f32 %v3736_v45 }
 0x264   : > { %v1425_v3 = vsub.f32 1.0, %v1424_v56  ;;  %v2404_v4 = vmul.f32 -1.442695, %v1080_v58  ;;  %2837 = vrcp.f32 %v1771_v51  ;;  %1839 = vadd.xlane.f32.xlu1 %v1838_v60  ;;  %v3743_v5 = vpop.eup %2829  ;;  %v1657_v60 = vand.u32 2147483647, %v3730_v38 }
 0x265   : > { %v1040_v6 = vpop.f32.mrf.mxu1  ;;  %2839 = vpow2.f32 %v1749_v53  ;;  %v1796_v9 = vsel %vm875_vm1, %v3743_v5, 0.0  ;;  %v3750_v17 = vpop.eup %2831  ;;  %v1450_v58 = vor.u32 1.1754944e-38, %v1449_v43 }
 0x266   : > { %2841 = vpow2.f32 %v2404_v4  ;;  %v1041_v12 = vadd.f32 %v3616_v57, %v1040_v6  ;;  %v1426_v59 = vmul.f32 %v2828_v23, %v1425_v3  ;;  %1797 = vadd.xlane.f32.xlu2 %v1796_v9  ;;  %v1649_v29 = vmul.f32 %v3750_v17, %v3730_v38 }
 0x267   : > { %v1659_v3 = vand.u32 2147483648, %v3730_v38  ;;  %vm1654_vm6 = vweird.f32 %v3750_v17 }
 0x268   : > { %v2834_v54 = vpop.eup %2833  ;;  %v2391_v18 = vmul.f32 -1.442695, %v1041_v12  ;;  %v1427_v20 = vadd.f32 %v2828_v23, %v1426_v59 }
 0x269   : > { %v2836_v1 = vpop.eup %2835  ;;  %v3753_v0 = vadd.f32 1.0, %v2834_v54  ;;  %v1774_v24 = vpop.xlane.xlu2 %1773 }
 0x26a   : > { %v1082_v26 = vpop.f32.mrf.mxu3  ;;  %v2838_v11 = vpop.eup %2837  ;;  %v1439_v62 = vmul.f32 %v2836_v1, %v3736_v45  ;;  %2843 = vpow2.f32 %v2391_v18  ;;  %v1431_v33 = vsel %vm1430_vm15, %v2828_v23, %v1427_v20  ;;  %vm1444_vm2 = vweird.f32 %v2836_v1 }
 0x26b   : > { %v1083_v61 = vadd.f32 %v3616_v57, %v1082_v26  ;;  %v1813_v31 = vpop.xlane.xlu1 %1812  ;;  %v3758_v35 = vpop.eup %2839  ;;  %2845 = vrcp.f32 %v3753_v0  ;;  %v1889_v36 = vmul.f32 %v2838_v11, %v3483_v15  ;;  %v1436_v32 = vsel %vm1433_vm0, %v1435_v28, %v1431_v33  ;;  %vm1445_vm4 = vmor %vm1443_vm3, %vm1444_vm2 }
 0x26c   : > { %v2842_v19 = vpop.eup %2841  ;;  %v1440_v46 = vsub.f32 1.0, %v1439_v62  ;;  %2847 = vrcp.f32 %v1774_v24  ;;  %v1721_v41 = vmul.f32 1.442695, %v1436_v32  ;;  %v1447_v57 = vand.u32 2147483647, %v3736_v45  ;;  %vm3827_vm2 = vmor %vm1653_vm7, %vm1654_vm6 }
 0x26d   : > { %v2405_v40 = vmul.f32 -1.442695, %v1083_v61  ;;  %v3764_v42 = vadd.f32 1.0, %v2842_v19  ;;  %1921 = vst.msk [vmem:[%s3626_s6 + $0x20] sm:$0xff] %vm875_vm1, %v1889_v36  ;;  %2849 = vrcp.f32 %v1813_v31  ;;  %v1841_v49 = vsel %vm875_vm1, %v3758_v35, 0.0 }
 0x26e   : > { %v1441_v15 = vmul.f32 %v2836_v1, %v1440_v46  ;;  %1842 = vadd.xlane.f32.xlu2 %v1841_v49  ;;  %v1650_v23 = vsub.f32 1.0, %v1649_v29  ;;  %vm1448_vm5 = vcmp.eq.f32.partialorder %v1447_v57, 8.507059e+37  ;;  %v1462_v26 = vand.u32 2147483647, %v3753_v0 }
 0x26f   : > { %2851 = vpow2.f32 %v2405_v40  ;;  %v3791_v28 = vor.u32 1.1754944e-38, %v1659_v3  ;;  %vm1458_vm9 = vweird.f32 %v3753_v0  ;;  %v1672_v33 = vand.u32 2147483647, %v3764_v42 }
 0x270   : > { %2853 = vrcp.f32 %v3764_v42  ;;  %v2844_v44 = vpop.eup %2843  ;;  %v1442_v13 = vadd.f32 %v2836_v1, %v1441_v15  ;;  %v1651_v20 = vmul.f32 %v3750_v17, %v1650_v23  ;;  %vm1463_vm11 = vcmp.eq.f32.partialorder %v1462_v26, 8.507059e+37 }
 0x271   : > { %2855 = vpow2.f32 %v1721_v41  ;;  %v2846_v51 = vpop.eup %2845  ;;  %v3774_v53 = vadd.f32 1.0, %v2844_v44  ;;  %v1816_v56 = vpop.xlane.xlu2 %1815  ;;  %v1674_v57 = vand.u32 2147483648, %v3764_v42  ;;  %vm1668_vm13 = vweird.f32 %v3764_v42 }
 0x272   : > { %v2848_v4 = vpop.eup %2847  ;;  %v1454_v6 = vmul.f32 %v2846_v51, %v3753_v0  ;;  %2857 = vrcp.f32 %v1816_v56  ;;  %v1446_v47 = vsel %vm1445_vm4, %v2836_v1, %v1442_v13  ;;  %vm1459_vm8 = vweird.f32 %v2846_v51 }
 0x273   : > { %v2850_v8 = vpop.eup %2849  ;;  %2859 = vrcp.f32 %v3774_v53  ;;  %v1890_v45 = vmul.f32 %v2848_v4, %v3499_v34  ;;  %v1451_v9 = vsel %vm1448_vm5, %v1450_v58, %v1446_v47  ;;  %v1464_v34 = vand.u32 2147483648, %v3753_v0  ;;  %vm1460_vm10 = vmor %vm1458_vm9, %vm1459_vm8 }
 0x274   : > { %v1455_v59 = vsub.f32 1.0, %v1454_v6  ;;  %v1903_v54 = vmul.f32 %v2850_v8, %v3495_v27  ;;  %v1723_v18 = vmul.f32 1.442695, %v1451_v9  ;;  %v3804_v19 = vadd.f32 %v3750_v17, %v1651_v20 }
 0x275   : > { %v2852_v12 = vpop.eup %2851  ;;  %1922 = vst.msk [vmem:[%s3626_s6 + $0x28] sm:$0xff] %vm875_vm1, %v1890_v45  ;;  %v1465_v41 = vor.u32 1.1754944e-38, %v1464_v34  ;;  %vm3812_vm14 = vcmp.eq.f32.partialorder %v1672_v33, 8.507059e+37  ;;  %v1477_v3 = vand.u32 2147483647, %v3774_v53  ;;  %v1675_v6 = vor.u32 1.1754944e-38, %v1674_v57 }
 0x276   : > { %v2854_v24 = vpop.eup %2853  ;;  %v3786_v1 = vadd.f32 1.0, %v2852_v12  ;;  %1935 = vst.msk [vmem:[%s3626_s6 + $0x90] sm:$0xff] %vm875_vm1, %v1903_v54  ;;  %v1819_v62 = vpop.xlane.xlu0 %1818  ;;  %2861 = vpow2.f32 %v1723_v18  ;;  %v1456_v61 = vmul.f32 %v2846_v51, %v1455_v59  ;;  %vm1473_vm3 = vweird.f32 %v3774_v53 }
 0x277   : > { %v3793_v11 = vpop.eup %2855  ;;  %v1664_v27 = vmul.f32 %v2854_v24, %v3764_v42  ;;  %vm1669_vm12 = vweird.f32 %v2854_v24  ;;  %v1479_v42 = vand.u32 2147483648, %v3774_v53  ;;  %v1656_v18 = vsel %vm3827_vm2, %v3750_v17, %v3804_v19 }
 0x278   : > { %2863 = vrcp.f32 %v3786_v1  ;;  %v1799_v31 = vsel %vm875_vm1, %v3793_v11, 0.0  ;;  %v2858_v29 = vpop.eup %2857  ;;  %v1457_v32 = vadd.f32 %v2846_v51, %v1456_v61  ;;  %vm1670_vm15 = vmor %vm1668_vm13, %vm1669_vm12  ;;  %vm1478_vm4 = vcmp.eq.f32.partialorder %v1477_v3, 8.507059e+37 }
 0x279   : > { %v1665_v36 = vsub.f32 1.0, %v1664_v27  ;;  %2865 = vrcp.f32 %v1819_v62  ;;  %1800 = vadd.xlane.f32.xlu0 %v1799_v31  ;;  %v2860_v46 = vpop.eup %2859  ;;  %v1904_v40 = vmul.f32 %v2858_v29, %v3517_v50  ;;  %v1687_v27 = vand.u32 2147483647, %v3786_v1 }
 0x27a   : > { %v1469_v0 = vmul.f32 %v2860_v46, %v3774_v53  ;;  %v1777_v43 = vpop.xlane.xlu1 %1776  ;;  %v1461_v49 = vsel %vm1460_vm10, %v2846_v51, %v1457_v32  ;;  %vm1474_vm0 = vweird.f32 %v2860_v46  ;;  %v1689_v53 = vand.u32 2147483648, %v3786_v1 }
 0x27b   : > { %v1666_v15 = vmul.f32 %v2854_v24, %v1665_v36  ;;  %1936 = vst.msk [vmem:[%s3626_s6 + $0x98] sm:$0xff] %vm875_vm1, %v1904_v40  ;;  %2867 = vrcp.f32 %v1777_v43  ;;  %v1466_v44 = vsel %vm1463_vm11, %v1465_v41, %v1461_v49  ;;  %vm1475_vm5 = vmor %vm1473_vm3, %vm1474_vm0  ;;  %vm1658_vm7 = vcmp.eq.f32.partialorder %v1657_v60, 8.507059e+37 }
 0x27c   : > { %v3816_v50 = vpop.eup %2861  ;;  %v1470_v13 = vsub.f32 1.0, %v1469_v0  ;;  %v1725_v56 = vmul.f32 1.442695, %v1466_v44  ;;  %vm1683_vm8 = vweird.f32 %v3786_v1  ;;  %v1661_v19 = vsel %vm1658_vm7, %v3791_v28, %v1656_v18 }
 0x27d   : > { %v1667_v58 = vadd.f32 %v2854_v24, %v1666_v15  ;;  %v1802_v4 = vsel %vm875_vm1, %v3816_v50, 0.0  ;;  %vm1688_vm10 = vcmp.eq.f32.partialorder %v1687_v27, 8.507059e+37  ;;  %v1751_v40 = vmul.f32 1.442695, %v1661_v19 }
 0x27e   : > { %v2864_v51 = vpop.eup %2863  ;;  %1803 = vadd.xlane.f32.xlu1 %v1802_v4  ;;  %2869 = vpow2.f32 %v1725_v56  ;;  %v1471_v9 = vmul.f32 %v2860_v46, %v1470_v13 }
 0x27f   : > { %v2866_v47 = vpop.eup %2865  ;;  %v1679_v8 = vmul.f32 %v2864_v51, %v3786_v1  ;;  %v1671_v45 = vsel %vm1670_vm15, %v2854_v24, %v1667_v58  ;;  %vm1684_vm6 = vweird.f32 %v2864_v51 }
 0x280   : > { %v1905_v59 = vmul.f32 %v2866_v47, %v3526_v22  ;;  %v1676_v54 = vsel %vm3812_vm14, %v1675_v6, %v1671_v45  ;;  %v1472_v26 = vadd.f32 %v2860_v46, %v1471_v9  ;;  %v1480_v22 = vor.u32 1.1754944e-38, %v1479_v42  ;;  %vm1685_vm9 = vmor %vm1683_vm8, %vm1684_vm6 }
 0x281   : > { %v1680_v20 = vsub.f32 1.0, %v1679_v8  ;;  %v1753_v24 = vmul.f32 1.442695, %v1676_v54  ;;  %v2868_v34 = vpop.eup %2867 }
 0x282   : > { %1937 = vst.msk [vmem:[%s3626_s6 + $0xa0] sm:$0xff] %vm875_vm1, %v1905_v59  ;;  %v1891_v62 = vmul.f32 %v2868_v34, %v3530_v21  ;;  %v1822_v61 = vpop.xlane.xlu1 %1821  ;;  %v1476_v17 = vsel %vm1475_vm5, %v2860_v46, %v1472_v26  ;;  %v1690_v46 = vor.u32 1.1754944e-38, %v1689_v53 }
 0x283   : > { %2871 = vpow2.f32 %v1753_v24  ;;  %v1681_v31 = vmul.f32 %v2864_v51, %v1680_v20  ;;  %v1481_v33 = vsel %vm1478_vm4, %v1480_v22, %v1476_v17 }
 0x284   : > { %2873 = vrcp.f32 %v1822_v61  ;;  %v3847_v29 = vpop.eup %2869  ;;  %1923 = vst.msk [vmem:[%s3626_s6 + $0x30] sm:$0xff] %vm875_vm1, %v1891_v62  ;;  %v1727_v36 = vmul.f32 1.442695, %v1481_v33 }
 0x285   : > { %v1682_v32 = vadd.f32 %v2864_v51, %v1681_v31  ;;  %v1805_v21 = vsel %vm875_vm1, %v3847_v29, 0.0 }
 0x286   : > { %1806 = vadd.xlane.f32.xlu2 %v1805_v21  ;;  %2875 = vpow2.f32 %v1727_v36 }
 0x287   : > { %v1686_v38 = vsel %vm1685_vm9, %v2864_v51, %v1682_v32 }
 0x288   : > { %v1691_v60 = vsel %vm1688_vm10, %v1690_v46, %v1686_v38 }
 0x289   : > { %v3856_v41 = vpop.eup %2871  ;;  %v1755_v57 = vmul.f32 1.442695, %v1691_v60 }
 0x28a   : > { %v2874_v0 = vpop.eup %2873  ;;  %v1847_v1 = vsel %vm875_vm1, %v3856_v41, 0.0 }
 0x28b   : > { %v1906_v28 = vmul.f32 %v2874_v0, %v3540_v37  ;;  %1848 = vadd.xlane.f32.xlu1 %v1847_v1  ;;  %2877 = vpow2.f32 %v1755_v57  ;;  %v1780_v43 = vpop.xlane.xlu2 %1779 }
 0x28c   : > { %2879 = vpow2.f32 %v1751_v40  ;;  %v3861_v49 = vpop.eup %2875 }
 0x28d   : > { %1938 = vst.msk [vmem:[%s3626_s6 + $0xa8] sm:$0xff] %vm875_vm1, %v1906_v28  ;;  %2881 = vrcp.f32 %v1780_v43  ;;  %v1808_v15 = vsel %vm875_vm1, %v3861_v49, 0.0 }
 0x28e   : > { %1809 = vadd.xlane.f32.xlu0 %v1808_v15 }
 0x291   : > { %v3867_v44 = vpop.eup %2877 }
 0x292   : > { %v3869_v23 = vpop.eup %2879  ;;  %v1850_v37 = vsel %vm875_vm1, %v3867_v44, 0.0 }
 0x293   : > { %v2882_v13 = vpop.eup %2881  ;;  %1851 = vadd.xlane.f32.xlu2 %v1850_v37  ;;  %v1825_v58 = vpop.xlane.xlu2 %1824  ;;  %v1844_v3 = vsel %vm875_vm1, %v3869_v23, 0.0 }
 0x294   : > { %v1892_v56 = vmul.f32 %v2882_v13, %v3555_v25  ;;  %2883 = vrcp.f32 %v1825_v58 }
 0x296   : > { %1924 = vst.msk [vmem:[%s3626_s6 + $0x38] sm:$0xff] %vm875_vm1, %v1892_v56  ;;  %v1783_v51 = vpop.xlane.xlu0 %1782  ;;  %1845 = vadd.xlane.f32.xlu0 %v1844_v3 }
 0x297   : > { %2885 = vrcp.f32 %v1783_v51 }
 0x29a   : > { %v2884_v4 = vpop.eup %2883 }
 0x29b   : > { %v1907_v6 = vmul.f32 %v2884_v4, %v3561_v16 }
 0x29d   : > { %v2886_v42 = vpop.eup %2885  ;;  %1939 = vst.msk [vmem:[%s3626_s6 + $0xb0] sm:$0xff] %vm875_vm1, %v1907_v6 }
 0x29e   : > { %v1893_v25 = vmul.f32 %v2886_v42, %v3569_v48  ;;  %v1828_v47 = vpop.xlane.xlu0 %1827 }
 0x29f   : > { %2887 = vrcp.f32 %v1828_v47 }
 0x2a0   : > { %1925 = vst.msk [vmem:[%s3626_s6 + $0x40] sm:$0xff] %vm875_vm1, %v1893_v25 }
 0x2a5   : > { %v2888_v8 = vpop.eup %2887  ;;  %v1786_v45 = vpop.xlane.xlu1 %1785 }
 0x2a6   : > { %v1908_v9 = vmul.f32 %v2888_v8, %v3578_v10  ;;  %2889 = vrcp.f32 %v1786_v45 }
 0x2a8   : > { %1940 = vst.msk [vmem:[%s3626_s6 + $0xb8] sm:$0xff] %vm875_vm1, %v1908_v9 }
 0x2ac   : > { %v2890_v16 = vpop.eup %2889 }
 0x2ad   : > { %v1894_v12 = vmul.f32 %v2890_v16, %v3602_v52  ;;  %v1789_v59 = vpop.xlane.xlu2 %1788  ;;  %v1831_v54 = vpop.xlane.xlu1 %1830 }
 0x2ae   : > { %2891 = vrcp.f32 %v1789_v59 }
 0x2af   : > { %1926 = vst.msk [vmem:[%s3626_s6 + $0x48] sm:$0xff] %vm875_vm1, %v1894_v12  ;;  %2893 = vrcp.f32 %v1831_v54 }
 0x2b4   : > { %v2892_v48 = vpop.eup %2891 }
 0x2b5   : > { %v2894_v18 = vpop.eup %2893  ;;  %v1895_v20 = vmul.f32 %v2892_v48, %v3624_v14 }
 0x2b6   : > { %v1909_v10 = vmul.f32 %v2894_v18, %v3611_v55 }
 0x2b7   : > { %1927 = vst.msk [vmem:[%s3626_s6 + $0x50] sm:$0xff] %vm875_vm1, %v1895_v20 }
 0x2b8   : > { %1941 = vst.msk [vmem:[%s3626_s6 + $0xc0] sm:$0xff] %vm875_vm1, %v1909_v10 }
 0x2b9   : > { %v1834_v52 = vpop.xlane.xlu2 %1833 }
 0x2ba   : > { %2895 = vrcp.f32 %v1834_v52 }
 0x2be   : > { %v1792_v24 = vpop.xlane.xlu0 %1791 }
 0x2bf   : > { %2897 = vrcp.f32 %v1792_v24 }
 0x2c0   : > { %v2896_v26 = vpop.eup %2895 }
 0x2c1   : > { %v1910_v34 = vmul.f32 %v2896_v26, %v3658_v2 }
 0x2c3   : > { %1942 = vst.msk [vmem:[%s3626_s6 + $0xc8] sm:$0xff] %vm875_vm1, %v1910_v34 }
 0x2c5   : > { %v2898_v22 = vpop.eup %2897 }
 0x2c6   : > { %v1896_v14 = vmul.f32 %v2898_v22, %v3663_v63  ;;  %v1837_v27 = vpop.xlane.xlu0 %1836 }
 0x2c7   : > { %2899 = vrcp.f32 %v1837_v27 }
 0x2c8   : > { %1928 = vst.msk [vmem:[%s3626_s6 + $0x58] sm:$0xff] %vm875_vm1, %v1896_v14 }
 0x2cd   : > { %v2900_v55 = vpop.eup %2899 }
 0x2ce   : > { %v1911_v53 = vmul.f32 %v2900_v55, %v3680_v7 }
 0x2cf   : > { %v1795_v62 = vpop.xlane.xlu1 %1794 }
 0x2d0   : > { %1943 = vst.msk [vmem:[%s3626_s6 + $0xd0] sm:$0xff] %vm875_vm1, %v1911_v53  ;;  %2901 = vrcp.f32 %v1795_v62 }
 0x2d6   : > { %v2902_v2 = vpop.eup %2901 }
 0x2d7   : > { %v1897_v61 = vmul.f32 %v2902_v2, %v3717_v30  ;;  %v1840_v17 = vpop.xlane.xlu1 %1839 }
 0x2d8   : > { %2903 = vrcp.f32 %v1840_v17 }
 0x2d9   : > { %1929 = vst.msk [vmem:[%s3626_s6 + $0x60] sm:$0xff] %vm875_vm1, %v1897_v61  ;;  %v1798_v63 = vpop.xlane.xlu2 %1797 }
 0x2da   : > { %2905 = vrcp.f32 %v1798_v63 }
 0x2de   : > { %v2904_v31 = vpop.eup %2903 }
 0x2df   : > { %v1912_v33 = vmul.f32 %v2904_v31, %v3733_v39 }
 0x2e0   : > { %v2906_v7 = vpop.eup %2905 }
 0x2e1   : > { %1944 = vst.msk [vmem:[%s3626_s6 + $0xd8] sm:$0xff] %vm875_vm1, %v1912_v33  ;;  %v1898_v36 = vmul.f32 %v2906_v7, %v3743_v5  ;;  %v1843_v32 = vpop.xlane.xlu2 %1842 }
 0x2e2   : > { %2907 = vrcp.f32 %v1843_v32 }
 0x2e3   : > { %1930 = vst.msk [vmem:[%s3626_s6 + $0x68] sm:$0xff] %vm875_vm1, %v1898_v36 }
 0x2e8   : > { %v2908_v30 = vpop.eup %2907 }
 0x2e9   : > { %v1913_v19 = vmul.f32 %v2908_v30, %v3758_v35 }
 0x2eb   : > { %1945 = vst.msk [vmem:[%s3626_s6 + $0xe0] sm:$0xff] %vm875_vm1, %v1913_v19 }
 0x2ec   : > { %v1801_v21 = vpop.xlane.xlu0 %1800 }
 0x2ed   : > { %2909 = vrcp.f32 %v1801_v21 }
 0x2f1   : > { %v1804_v46 = vpop.xlane.xlu1 %1803 }
 0x2f2   : > { %2911 = vrcp.f32 %v1804_v46 }
 0x2f3   : > { %v2910_v39 = vpop.eup %2909 }
 0x2f4   : > { %v1899_v38 = vmul.f32 %v2910_v39, %v3793_v11 }
 0x2f6   : > { %1931 = vst.msk [vmem:[%s3626_s6 + $0x70] sm:$0xff] %vm875_vm1, %v1899_v38 }
 0x2f8   : > { %v2912_v5 = vpop.eup %2911 }
 0x2f9   : > { %v1900_v60 = vmul.f32 %v2912_v5, %v3816_v50  ;;  %v1807_v40 = vpop.xlane.xlu2 %1806 }
 0x2fa   : > { %2913 = vrcp.f32 %v1807_v40 }
 0x2fb   : > { %1932 = vst.msk [vmem:[%s3626_s6 + $0x78] sm:$0xff] %vm875_vm1, %v1900_v60 }
 0x2fe   : > { %v1849_v35 = vpop.xlane.xlu1 %1848 }
 0x2ff   : > { %2915 = vrcp.f32 %v1849_v35 }
 0x300   : > { %v2914_v57 = vpop.eup %2913 }
 0x301   : > { %v1901_v0 = vmul.f32 %v2914_v57, %v3847_v29  ;;  %v1810_v1 = vpop.xlane.xlu0 %1809 }
 0x302   : > { %2917 = vrcp.f32 %v1810_v1 }
 0x303   : > { %1933 = vst.msk [vmem:[%s3626_s6 + $0x80] sm:$0xff] %vm875_vm1, %v1901_v0 }
 0x305   : > { %v2916_v11 = vpop.eup %2915 }
 0x306   : > { %v1915_v28 = vmul.f32 %v2916_v11, %v3856_v41  ;;  %v1852_v50 = vpop.xlane.xlu2 %1851 }
 0x307   : > { %2919 = vrcp.f32 %v1852_v50 }
 0x308   : > { %1947 = vst.msk [vmem:[%s3626_s6 + $0xf0] sm:$0xff] %vm875_vm1, %v1915_v28  ;;  %v2918_v43 = vpop.eup %2917 }
 0x309   : > { %v1902_v15 = vmul.f32 %v2918_v43, %v3861_v49  ;;  %v1846_v37 = vpop.xlane.xlu0 %1845 }
 0x30a   : > { %2921 = vrcp.f32 %v1846_v37 }
 0x30b   : > { %1934 = vst.msk [vmem:[%s3626_s6 + $0x88] sm:$0xff] %vm875_vm1, %v1902_v15 }
 0x30d   : > { %v2920_v29 = vpop.eup %2919 }
 0x30e   : > { %v1916_v13 = vmul.f32 %v2920_v29, %v3867_v44 }
 0x30f   : > { %1955 = sbr.rel (!%p3070_p4) target bundleno = 852 (0x354), region = 44 }
 0x310   : > { %1948 = vst.msk [vmem:[%s3626_s6 + $0xf8] sm:$0xff] %vm875_vm1, %v1916_v13  ;;  %v2922_v56 = vpop.eup %2921 }
 0x311   : > { %v1914_v58 = vmul.f32 %v2922_v56, %v3869_v23 }
 0x313   : > { %1946 = vst.msk [vmem:[%s3626_s6 + $0xe8] sm:$0xff] %vm875_vm1, %v1914_v58 }
 0x314   : > { %s4114_s7 = smov (!%p1958_p8, %s1957_s7), 32 }
 0x315   : > { %s2408_s12 = sshll.u32 %s4114_s7, 3 }
 0x316   : > { %p2411_p9 = scmp.eq.s32.totalorder %s2408_s12, 0 }
 0x317   : > { %s3951_s13 = sshrl.u32 (!%p2411_p9), %s4114_s7, 5 }
 0x318   : > { %1966 = sbr.rel (%p2411_p9) target bundleno = 852 (0x354), region = 48  ;;  %p2412_p10 = scmp.le.s32.totalorder (!%p2411_p9), %s3951_s13, 0 }
 0x31d   : > { %2251 = sbr.rel (%p2412_p10) target bundleno = 835 (0x343), region = 127  ;;  %s4105_s21 = smov (!%p2412_p10), %s3945_s11 }
 0x31e   : > { %s4106_s26 = smov (!%p2412_p10), %s3626_s6  ;;  %s3960_s27 = smov (!%p2412_p10), 0  }
 0x31f   : > { %s3962_s14 = smov (!%p2412_p10), 0  }
 0x322 LB: >> { %v2091_v41 = vld [vmem:[%s2986_s26] sm:$0xff]  ;;  %v2093_v49 = vld [vmem:[%s2986_s26 + $0x8] sm:$0xff]  ;;  %v2095_v44 = vld [vmem:[%s2986_s26 + $0x10] sm:$0xff]  ;;  %s2155_s15 = sadd.s32 1, %s2990_s27  ;;  %s2085_s14 = sadd.s32 1, %s2994_s14   ;;  %s2994_s14 = sphi %s3962_s14, %s2085_s14   ;;  %s2990_s27 = sphi %s3960_s27, %s4109_s27   ;;  %s2986_s26 = sphi %s4106_s26, %s4108_s26   ;;  %s2982_s21 = sphi %s4105_s21, %s4107_s21  }
 0x323   : >> { %2092 = vst [vmem:[%s2982_s21] sm:$0xff] %v2091_v41  ;;  %v2097_v23 = vld [vmem:[%s2986_s26 + $0x18] sm:$0xff]  ;;  %p2156_p11 = scmp.ge.s32.totalorder %s2155_s15, %s3951_s13  ;;  %v2099_v3 = vld [vmem:[%s2986_s26 + $0x20] sm:$0xff]  ;;  %v2101_v51 = vld [vmem:[%s2986_s26 + $0x28] sm:$0xff]  ;;  %p2084_p12 = scmp.ge.s32.totalorder %s2085_s14, %s3951_s13 }
 0x324   : >> { %2094 = vst [vmem:[%s2982_s21 + $0x8] sm:$0xff] %v2093_v49  ;;  %v2103_v4 = vld [vmem:[%s2986_s26 + $0x30] sm:$0xff]  ;;  %v2105_v6 = vld [vmem:[%s2986_s26 + $0x38] sm:$0xff]  ;;  %v2107_v42 = vld [vmem:[%s2986_s26 + $0x40] sm:$0xff] }
 0x325   : >> { %2096 = vst [vmem:[%s2982_s21 + $0x10] sm:$0xff] %v2095_v44  ;;  %s4116_s15 = smov (%p2156_p11, %s2155_s15), 0  ;;  %v2109_v25 = vld [vmem:[%s2986_s26 + $0x48] sm:$0xff]  ;;  %v2111_v47 = vld [vmem:[%s2986_s26 + $0x50] sm:$0xff]  ;;  %v2113_v8 = vld [vmem:[%s2986_s26 + $0x58] sm:$0xff] }
 0x326   : >> { %2098 = vst [vmem:[%s2982_s21 + $0x18] sm:$0xff] %v2097_v23  ;;  %s2413_s16 = sshll.u32 %s4116_s15, 8  ;;  %v2115_v45 = vld [vmem:[%s2986_s26 + $0x60] sm:$0xff]  ;;  %v2117_v9 = vld [vmem:[%s2986_s26 + $0x68] sm:$0xff]  ;;  %v2119_v16 = vld [vmem:[%s2986_s26 + $0x70] sm:$0xff]  ;;  %s4109_s27 = smov %s4116_s15 }
 0x327   : >> { %2100 = vst [vmem:[%s2982_s21 + $0x20] sm:$0xff] %v2099_v3  ;;  %s3994_s17 = scalar_lea.vmem %s3626_s6, %s2413_s16 [#allocation2]   ;;  %s3997_s20 = scalar_lea.vmem %s3945_s11, %s2413_s16   ;;  %v2121_v12 = vld [vmem:[%s2986_s26 + $0x78] sm:$0xff]  ;;  %v2123_v59 = vld [vmem:[%s2986_s26 + $0x80] sm:$0xff]  ;;  %v2125_v54 = vld [vmem:[%s2986_s26 + $0x88] sm:$0xff] }
 0x328   : >> { %2102 = vst [vmem:[%s2982_s21 + $0x28] sm:$0xff] %v2101_v51  ;;  %v2127_v48 = vld [vmem:[%s2986_s26 + $0x90] sm:$0xff]  ;;  %v2129_v18 = vld [vmem:[%s2986_s26 + $0x98] sm:$0xff]  ;;  %v2131_v20 = vld [vmem:[%s2986_s26 + $0xa0] sm:$0xff] }
 0x329   : >> { %2104 = vst [vmem:[%s2982_s21 + $0x30] sm:$0xff] %v2103_v4  ;;  %v2133_v10 = vld [vmem:[%s2986_s26 + $0xa8] sm:$0xff]  ;;  %v2135_v52 = vld [vmem:[%s2986_s26 + $0xb0] sm:$0xff]  ;;  %v2137_v24 = vld [vmem:[%s2986_s26 + $0xb8] sm:$0xff] }
 0x32a   : >> { %2106 = vst [vmem:[%s2982_s21 + $0x38] sm:$0xff] %v2105_v6  ;;  %v2139_v26 = vld [vmem:[%s2986_s26 + $0xc0] sm:$0xff]  ;;  %v2141_v34 = vld [vmem:[%s2986_s26 + $0xc8] sm:$0xff]  ;;  %v2143_v22 = vld [vmem:[%s2986_s26 + $0xd0] sm:$0xff] }
 0x32b   : >> { %2108 = vst [vmem:[%s2982_s21 + $0x40] sm:$0xff] %v2107_v42  ;;  %v2145_v14 = vld [vmem:[%s2986_s26 + $0xd8] sm:$0xff]  ;;  %v2147_v27 = vld [vmem:[%s2986_s26 + $0xe0] sm:$0xff]  ;;  %v2149_v55 = vld [vmem:[%s2986_s26 + $0xe8] sm:$0xff] }
 0x32c   : >> { %2110 = vst [vmem:[%s2982_s21 + $0x48] sm:$0xff] %v2109_v25  ;;  %v2151_v53 = vld [vmem:[%s2986_s26 + $0xf0] sm:$0xff]  ;;  %v2153_v62 = vld [vmem:[%s2986_s26 + $0xf8] sm:$0xff]  ;;  %s4108_s26 = smov %s3994_s17 }
 0x32d   : >> { %2112 = vst [vmem:[%s2982_s21 + $0x50] sm:$0xff] %v2111_v47 }
 0x32e   : >> { %2114 = vst [vmem:[%s2982_s21 + $0x58] sm:$0xff] %v2113_v8 }
 0x32f   : >> { %2116 = vst [vmem:[%s2982_s21 + $0x60] sm:$0xff] %v2115_v45 }
 0x330   : >> { %2118 = vst [vmem:[%s2982_s21 + $0x68] sm:$0xff] %v2117_v9 }
 0x331   : >> { %2120 = vst [vmem:[%s2982_s21 + $0x70] sm:$0xff] %v2119_v16 }
 0x332   : >> { %2122 = vst [vmem:[%s2982_s21 + $0x78] sm:$0xff] %v2121_v12 }
 0x333   : >> { %2124 = vst [vmem:[%s2982_s21 + $0x80] sm:$0xff] %v2123_v59 }
 0x334   : >> { %2126 = vst [vmem:[%s2982_s21 + $0x88] sm:$0xff] %v2125_v54 }
 0x335   : >> { %2128 = vst [vmem:[%s2982_s21 + $0x90] sm:$0xff] %v2127_v48 }
 0x336   : >> { %2130 = vst [vmem:[%s2982_s21 + $0x98] sm:$0xff] %v2129_v18 }
 0x337   : >> { %2132 = vst [vmem:[%s2982_s21 + $0xa0] sm:$0xff] %v2131_v20 }
 0x338   : >> { %2134 = vst [vmem:[%s2982_s21 + $0xa8] sm:$0xff] %v2133_v10 }
 0x339   : >> { %2136 = vst [vmem:[%s2982_s21 + $0xb0] sm:$0xff] %v2135_v52 }
 0x33a   : >> { %2138 = vst [vmem:[%s2982_s21 + $0xb8] sm:$0xff] %v2137_v24 }
 0x33b   : >> { %2140 = vst [vmem:[%s2982_s21 + $0xc0] sm:$0xff] %v2139_v26 }
 0x33c   : >> { %2142 = vst [vmem:[%s2982_s21 + $0xc8] sm:$0xff] %v2141_v34 }
 0x33d   : >> { %2144 = vst [vmem:[%s2982_s21 + $0xd0] sm:$0xff] %v2143_v22 }
 0x33e   : >> { %2146 = vst [vmem:[%s2982_s21 + $0xd8] sm:$0xff] %v2145_v14  ;;  %2087 = sbr.rel (!%p2084_p12) target bundleno = 802 (0x322), region = 133 }
 0x33f   : >> { %2148 = vst [vmem:[%s2982_s21 + $0xe0] sm:$0xff] %v2147_v27 }
 0x340   : >> { %2150 = vst [vmem:[%s2982_s21 + $0xe8] sm:$0xff] %v2149_v55 }
 0x341   : >> { %2152 = vst [vmem:[%s2982_s21 + $0xf0] sm:$0xff] %v2151_v53 }
 0x342   : >> { %2154 = vst [vmem:[%s2982_s21 + $0xf8] sm:$0xff] %v2153_v62  ;;  %s4107_s21 = smov %s3997_s20 }
 0x343 PF: > { %s4062_s28 = sand.u32 31, %s4114_s7   ;;  %s2424_s23 = sshll.u32 %s3951_s13, 8 }
 0x344   : > { %s2166_s24 = scalar_lea.vmem %s3626_s6, %s2424_s23 [#allocation2]   ;;  %s2168_s29 = scalar_lea.vmem %s3945_s11, %s2424_s23  }
 0x345   : > { %p2418_p13 = scmp.le.s32.totalorder %s4062_s28, 0 }
 0x346   : > { %s2996_s18 = smov (!%p2418_p13), %s2168_s29   ;;  %s3000_s30 = smov (!%p2418_p13), %s2166_s24  }
 0x347   : > { %2265 = sbr.rel (%p2418_p13) target bundleno = 852 (0x354), region = 138  ;;  %s3004_s8 = smov (!%p2418_p13), 0  }
 0x348   : > { %s3008_s9 = smov (!%p2418_p13), 0  }
 0x34c LB: >> { %v2178_v2 = vld [vmem:[%s3002_s30] sm:$0xff]  ;;  %s2180_s7 = sadd.s32 1, %s3006_s8  ;;  %s2172_s9 = sadd.s32 1, %s3010_s9   ;;  %s3010_s9 = sphi %s3008_s9, %s2172_s9   ;;  %s3006_s8 = sphi %s3004_s8, %s3005_s8   ;;  %s3002_s30 = sphi %s3000_s30, %s2185_s30   ;;  %s2998_s18 = sphi %s2996_s18, %s2186_s18  }
 0x34d   : >> { %2179 = vst [vmem:[%s2998_s18] sm:$0xff] %v2178_v2  ;;  %p2181_p0 = scmp.ge.s32.totalorder %s2180_s7, %s4062_s28  ;;  %p2171_p1 = scmp.ge.s32.totalorder %s2172_s9, %s4062_s28 }
 0x34f   : >> { %s4118_s7 = smov (%p2181_p0, %s2180_s7), 0  ;;  %2174 = sbr.rel (!%p2171_p1) target bundleno = 844 (0x34c), region = 144 }
 0x350   : >> { %s2419_s6 = sshll.u32 %s4118_s7, 3  ;;  %s3005_s8 = smov %s4118_s7  }
 0x351   : >> { %s2185_s30 = scalar_lea.vmem %s2166_s24, %s2419_s6 [#allocation2]   ;;  %s2186_s18 = scalar_lea.vmem %s2168_s29, %s2419_s6  }
 0x354 PF: > { %p12_p2 = scmp.ge.s32.totalorder %s3060_s22, 4   ;;  %s4110_s18 = smov %s2974_s19 }
 0x355   : > { %s4111_s19 = smov %s3068_s25  ;;  %s4112_s20 = smov %s3060_s22 }
 0x356   :  { %14 = sbr.rel (!%p12_p2) target bundleno = 2 (0x2), region = 155 }

</bundles_post_ra>
